<compile_context>
chip_gen: v7x
topology: tpu7x:2x2x1
jax: 0.10.0
libtpu: 0.0.40
codegen_flags: <defaults>
</compile_context>

<pallas_src>
import functools

import jax
import jax.numpy as jnp
from jax.experimental import pallas as pl
from jax.experimental.pallas import tpu as pltpu


# ------------------------------ Pallas kernel --------------------------------

def _encoder_stack_kernel(
    src_ref,        # (Nb, S, E)
    mask_ref,       # (Nb, 1, S)    additive key-padding bias (0 or -1e30)
    in_w_ref,       # (1, E, 3E)    in_proj_weight^T   (contraction-major)
    in_b_ref,       # (1, 1, 3E)
    out_w_ref,      # (1, E, E)     out_proj.weight^T
    out_b_ref,      # (1, 1, E)
    n1_w_ref,       # (1, 1, E)
    n1_b_ref,       # (1, 1, E)
    l1_w_ref,       # (1, E, FF)    linear1.weight^T
    l1_b_ref,       # (1, 1, FF)
    l2_w_ref,       # (1, FF, E)    linear2.weight^T
    l2_b_ref,       # (1, 1, E)
    n2_w_ref,       # (1, 1, E)
    n2_b_ref,       # (1, 1, E)
    out_ref,        # (Nb, S, E)
    attn_ref,       # (1, Nb, S, S)
    x_scr,          # VMEM (Nb, S, E)  activations, resident across layer axis
    o_scr,          # VMEM (Nb, S, E)  per-head attention output slab
    *,
    nhead: int,
):
    layer = pl.program_id(1)
    last_layer = pl.num_programs(1) - 1

    # First layer for this batch block: load activations into the resident buffer.
    @pl.when(layer == 0)
    def _():
        x_scr[...] = src_ref[...]

    x3 = x_scr[...]                         # (Nb, S, E)
    Nb, S, E = x3.shape
    dh = E // nhead
    scale = 1.0 / (dh ** 0.5)

    x = x3.reshape(Nb * S, E)               # flatten batch*seq for wide matmuls

    # ---- fused QKV projection (one wide MXU matmul, no weight transpose) ----
    qkv = jnp.dot(x, in_w_ref[0], preferred_element_type=jnp.float32) + in_b_ref[0]
    q = (qkv[:, 0:E] * scale).reshape(Nb, S, E)
    k = qkv[:, E:2 * E].reshape(Nb, S, E)
    v = qkv[:, 2 * E:3 * E].reshape(Nb, S, E)

    key_bias = mask_ref[...]                # (Nb, 1, S), broadcasts over queries

    # ---- multi-head attention: static head unroll, Nb-batched einsums ----
    attn_sum = jnp.zeros((Nb, S, S), jnp.float32)
    for h in range(nhead):
        sl = slice(h * dh, (h + 1) * dh)
        scores = jnp.einsum("bqd,bkd->bqk", q[..., sl], k[..., sl],
                            preferred_element_type=jnp.float32) + key_bias
        scores = scores - jnp.max(scores, axis=-1, keepdims=True)
        expv = jnp.exp(scores)
        probs = expv * pl.reciprocal(jnp.sum(expv, axis=-1, keepdims=True),
                                     approx=True)
        attn_sum = attn_sum + probs
        # write this head's output directly into its lane slice of the slab
        o_scr[:, :, sl] = jnp.einsum("bqk,bkd->bqd", probs, v[..., sl],
                                     preferred_element_type=jnp.float32)

    # MultiheadAttention returns head-averaged attention weights.
    attn_ref[0] = attn_sum * (1.0 / nhead)

    o = o_scr[...].reshape(Nb * S, E)
    attn_out = jnp.dot(o, out_w_ref[0],
                       preferred_element_type=jnp.float32) + out_b_ref[0]

    # ---- residual + LayerNorm 1 (dropout = 0) ----
    y = x + attn_out
    mu = jnp.mean(y, axis=-1, keepdims=True)
    var = jnp.mean((y - mu) ** 2, axis=-1, keepdims=True)
    y = (y - mu) * jax.lax.rsqrt(var + 1e-5) * n1_w_ref[0] + n1_b_ref[0]

    # ---- feed-forward: linear2(relu(linear1(y))) ----
    h1 = jnp.maximum(
        jnp.dot(y, l1_w_ref[0], preferred_element_type=jnp.float32) + l1_b_ref[0],
        0.0)
    ff = jnp.dot(h1, l2_w_ref[0], preferred_element_type=jnp.float32) + l2_b_ref[0]

    # ---- residual + LayerNorm 2 ----
    z = y + ff
    mu2 = jnp.mean(z, axis=-1, keepdims=True)
    var2 = jnp.mean((z - mu2) ** 2, axis=-1, keepdims=True)
    z = (z - mu2) * jax.lax.rsqrt(var2 + 1e-5) * n2_w_ref[0] + n2_b_ref[0]

    # keep activations resident for the next layer
    x_scr[...] = z.reshape(Nb, S, E)

    @pl.when(layer == last_layer)
    def _():
        out_ref[...] = x_scr[...]


# ------------------------------ helpers ---------------------------------------

def _pick_batch_block(N, S, max_rows=1024):
    """Nb batch elements per grid step; aim for >=128 flattened rows."""
    divs = [d for d in range(1, N + 1) if N % d == 0]
    good = [d for d in divs if 128 <= d * S <= max_rows]
    if good:
        return min(good, key=lambda d: abs(d * S - 256))
    fit = [d for d in divs if d * S <= max_rows]
    return max(fit) if fit else 1


def _vmem_limit_bytes(Nb, S, E, FF):
    f = 4  # fp32
    weights = (E * 3 * E + 3 * E + E * E + E + 4 * E
               + E * FF + FF + FF * E + E + 2 * E) * f
    blocks = (2 * Nb * S * E + Nb * S + Nb * S * S) * f
    scratch = 2 * Nb * S * E * f
    work = 8 * Nb * S * max(3 * E, FF) * f
    est = 2 * (weights + blocks) + scratch + work
    return int(min(max(est, 32 * 2 ** 20), 100 * 2 ** 20))


# ------------------------------ wrapper ----------------------------------------

def transformer_encoder(src, src_key_padding_mask, params, *, nhead):
    """src: (S, N, E) fp32; src_key_padding_mask: (N, S) bool (True = pad).

    Returns (output (S, N, E), weights (num_layers, N, S, S)) exactly like the
    PyTorch TransformerEncoder.forward (dropout = 0).
    """
    S, N, E = src.shape
    assert E % nhead == 0, "d_model must be divisible by nhead"
    L = params["in_w"].shape[0]

    x = jnp.transpose(src, (1, 0, 2)).astype(jnp.float32)        # (N, S, E)
    if L == 0:
        return jnp.transpose(x, (1, 0, 2)), None

    FF = params["l1_w"].shape[2]
    # Additive key-padding bias (fully-masked rows -> uniform softmax, not NaN).
    mask_bias = jnp.where(src_key_padding_mask, -1e30, 0.0).astype(
        jnp.float32).reshape(N, 1, S)

    Nb = _pick_batch_block(N, S)
    B = N // Nb

    wspec = lambda shape: pl.BlockSpec(shape, lambda b, l: (l, 0, 0))

    out, attn = pl.pallas_call(
        functools.partial(_encoder_stack_kernel, nhead=nhead),
        out_shape=(
            jax.ShapeDtypeStruct((N, S, E), jnp.float32),
            jax.ShapeDtypeStruct((L, N, S, S), jnp.float32),
        ),
        grid_spec=pltpu.PrefetchScalarGridSpec(
            num_scalar_prefetch=0,
            grid=(B, L),                                 # layer axis innermost
            in_specs=[
                pl.BlockSpec((Nb, S, E), lambda b, l: (b, 0, 0)),   # src
                pl.BlockSpec((Nb, 1, S), lambda b, l: (b, 0, 0)),   # mask bias
                wspec((1, E, 3 * E)),                               # in_proj W^T
                wspec((1, 1, 3 * E)),                               # in_proj b
                wspec((1, E, E)),                                   # out_proj W^T
                wspec((1, 1, E)),                                   # out_proj b
                wspec((1, 1, E)), wspec((1, 1, E)),                 # norm1 w, b
                wspec((1, E, FF)), wspec((1, 1, FF)),               # linear1 W^T, b
                wspec((1, FF, E)), wspec((1, 1, E)),                # linear2 W^T, b
                wspec((1, 1, E)), wspec((1, 1, E)),                 # norm2 w, b
            ],
            out_specs=[
                pl.BlockSpec((Nb, S, E), lambda b, l: (b, 0, 0)),       # resident
                pl.BlockSpec((1, Nb, S, S), lambda b, l: (l, b, 0, 0)),
            ],
            scratch_shapes=[
                pltpu.VMEM((Nb, S, E), jnp.float32),   # resident activations
                pltpu.VMEM((Nb, S, E), jnp.float32),   # per-head output slab
            ],
        ),
        compiler_params=pltpu.CompilerParams(
            dimension_semantics=("parallel", "arbitrary"),
            vmem_limit_bytes=_vmem_limit_bytes(Nb, S, E, FF),
        ),
    )(
        x, mask_bias,
        params["in_w"], params["in_b"], params["out_w"], params["out_b"],
        params["n1_w"], params["n1_b"], params["l1_w"], params["l1_b"],
        params["l2_w"], params["l2_b"], params["n2_w"], params["n2_b"],
    )
    return jnp.transpose(out, (1, 0, 2)), attn


# ------------------------------ params -----------------------------------------

def init_params(key, num_layers, d_model, nhead, dim_feedforward):
    """All weight matrices are stored contraction-major (pre-transposed relative
    to the PyTorch nn.Linear convention) and stacked with a leading layer axis,
    so the kernel never transposes weights on-chip."""
    del nhead
    L, E, FF = num_layers, d_model, dim_feedforward
    ks = jax.random.split(key, 8)
    w = lambda k, shape, s=0.05: s * jax.random.normal(k, shape, jnp.float32)
    return {
        "in_w": w(ks[0], (L, E, 3 * E)),
        "in_b": w(ks[1], (L, 1, 3 * E), 0.02),
        "out_w": w(ks[2], (L, E, E)),
        "out_b": w(ks[3], (L, 1, E), 0.02),
        "n1_w": jnp.ones((L, 1, E), jnp.float32),
        "n1_b": jnp.zeros((L, 1, E), jnp.float32),
        "l1_w": w(ks[4], (L, E, FF)),
        "l1_b": w(ks[5], (L, 1, FF), 0.02),
        "l2_w": w(ks[6], (L, FF, E)),
        "l2_b": w(ks[7], (L, 1, E), 0.02),
        "n2_w": jnp.ones((L, 1, E), jnp.float32),
        "n2_b": jnp.zeros((L, 1, E), jnp.float32),
    }


# ------------------------------ pure-JAX reference ------------------------------

def _layer_norm(x, w, b, eps=1e-5):
    mu = jnp.mean(x, axis=-1, keepdims=True)
    var = jnp.mean((x - mu) ** 2, axis=-1, keepdims=True)
    return (x - mu) * jax.lax.rsqrt(var + eps) * w + b


def _reference_forward(src, key_padding_mask, p, *, nhead):
    S, N, E = src.shape
    L = p["in_w"].shape[0]
    dh = E // nhead
    x = jnp.transpose(src, (1, 0, 2))                               # (N, S, E)
    bias = jnp.where(key_padding_mask, -1e30, 0.0).astype(jnp.float32)[:, None, None, :]
    attns = []
    for l in range(L):
        qkv = x @ p["in_w"][l] + p["in_b"][l]
        q = qkv[..., :E] * (1.0 / dh ** 0.5)
        k = qkv[..., E:2 * E]
        v = qkv[..., 2 * E:]
        qh = q.reshape(N, S, nhead, dh).transpose(0, 2, 1, 3)
        kh = k.reshape(N, S, nhead, dh).transpose(0, 2, 1, 3)
        vh = v.reshape(N, S, nhead, dh).transpose(0, 2, 1, 3)
        s = jnp.einsum("nhqd,nhkd->nhqk", qh, kh) + bias
        pr = jax.nn.softmax(s, axis=-1)
        attns.append(jnp.mean(pr, axis=1))
        o = jnp.einsum("nhqk,nhkd->nhqd", pr, vh).transpose(0, 2, 1, 3).reshape(N, S, E)
        a = o @ p["out_w"][l] + p["out_b"][l]
        y = _layer_norm(x + a, p["n1_w"][l], p["n1_b"][l])
        h1 = jnp.maximum(y @ p["l1_w"][l] + p["l1_b"][l], 0.0)
        x = _layer_norm(y + h1 @ p["l2_w"][l] + p["l2_b"][l],
                        p["n2_w"][l], p["n2_b"][l])
    return jnp.transpose(x, (1, 0, 2)), jnp.stack(attns, axis=0)


# ------------------------------ main -------------------------------------------

if __name__ == "__main__":
    S, N, E = 8, 2, 32          # seq_len, batch, d_model
    NHEAD = 4
    FF = 64
    NUM_LAYERS = 2

    key = jax.random.PRNGKey(0)
    k_src, k_par = jax.random.split(key)

    src = jax.random.normal(k_src, (S, N, E), jnp.float32)
    # key padding mask: last 2 positions of batch element 1 are padded
    src_key_padding_mask = jnp.zeros((N, S), jnp.bool_).at[1, S - 2:].set(True)

    params = init_params(k_par, NUM_LAYERS, E, NHEAD, FF)

    output, weights = transformer_encoder(
        src, src_key_padding_mask, params, nhead=NHEAD)
    output = jax.block_until_ready(output)
    weights = jax.block_until_ready(weights)

    assert output.shape == (S, N, E)
    assert weights.shape == (NUM_LAYERS, N, S, S)

    ref_out, ref_w = _reference_forward(
        src, src_key_padding_mask, params, nhead=NHEAD)
    assert jnp.allclose(output, ref_out, atol=1e-2, rtol=1e-2), "output mismatch"
    assert jnp.allclose(weights, ref_w, atol=1e-2, rtol=1e-2), "attn-weights mismatch"

    print("KERNEL_OK")
</pallas_src>

<mosaic_0001>
module attributes {stable_mosaic.version = 11 : i64} {
  func.func @_encoder_stack_kernel(%arg0: i32, %arg1: i32, %arg2: memref<2x8x32xf32, #tpu.memory_space<vmem>>, %arg3: memref<2x1x8xf32, #tpu.memory_space<vmem>>, %arg4: memref<1x32x96xf32, #tpu.memory_space<vmem>>, %arg5: memref<1x1x96xf32, #tpu.memory_space<vmem>>, %arg6: memref<1x32x32xf32, #tpu.memory_space<vmem>>, %arg7: memref<1x1x32xf32, #tpu.memory_space<vmem>>, %arg8: memref<1x1x32xf32, #tpu.memory_space<vmem>>, %arg9: memref<1x1x32xf32, #tpu.memory_space<vmem>>, %arg10: memref<1x32x64xf32, #tpu.memory_space<vmem>>, %arg11: memref<1x1x64xf32, #tpu.memory_space<vmem>>, %arg12: memref<1x64x32xf32, #tpu.memory_space<vmem>>, %arg13: memref<1x1x32xf32, #tpu.memory_space<vmem>>, %arg14: memref<1x1x32xf32, #tpu.memory_space<vmem>>, %arg15: memref<1x1x32xf32, #tpu.memory_space<vmem>>, %arg16: memref<2x8x32xf32, #tpu.memory_space<vmem>>, %arg17: memref<1x2x8x8xf32, #tpu.memory_space<vmem>>, %arg18: memref<2x8x32xf32, #tpu.memory_space<vmem>>, %arg19: memref<2x8x32xf32, #tpu.memory_space<vmem>>) attributes {dimension_semantics = [#tpu.dimension_semantics<parallel>, #tpu.dimension_semantics<arbitrary>], iteration_bounds = array<i64: 1, 2>, scalar_prefetch = 0 : i64, scratch_operands = 2 : i64, tpu.core_type = #tpu.core_type<tc>, window_params = [{transform_indices = @transform_0, window_bounds = array<i64: 2, 8, 32>}, {transform_indices = @transform_1, window_bounds = array<i64: 2, 1, 8>}, {transform_indices = @transform_2, window_bounds = array<i64: 1, 32, 96>}, {transform_indices = @transform_3, window_bounds = array<i64: 1, 1, 96>}, {transform_indices = @transform_4, window_bounds = array<i64: 1, 32, 32>}, {transform_indices = @transform_5, window_bounds = array<i64: 1, 1, 32>}, {transform_indices = @transform_6, window_bounds = array<i64: 1, 1, 32>}, {transform_indices = @transform_7, window_bounds = array<i64: 1, 1, 32>}, {transform_indices = @transform_8, window_bounds = array<i64: 1, 32, 64>}, {transform_indices = @transform_9, window_bounds = array<i64: 1, 1, 64>}, {transform_indices = @transform_10, window_bounds = array<i64: 1, 64, 32>}, {transform_indices = @transform_11, window_bounds = array<i64: 1, 1, 32>}, {transform_indices = @transform_12, window_bounds = array<i64: 1, 1, 32>}, {transform_indices = @transform_13, window_bounds = array<i64: 1, 1, 32>}, {transform_indices = @transform_14, window_bounds = array<i64: 2, 8, 32>}, {transform_indices = @transform_15, window_bounds = array<i64: 1, 2, 8, 8>}]} {
    %c0_i32 = arith.constant 0 : i32
    %0 = arith.cmpi eq, %arg1, %c0_i32 : i32
    %1 = arith.extui %0 : i1 to i32
    %c0_i32_0 = arith.constant 0 : i32
    %2 = arith.cmpi ne, %1, %c0_i32_0 : i32
    scf.if %2 {
      %c0_95 = arith.constant 0 : index
      %c0_96 = arith.constant 0 : index
      %c0_97 = arith.constant 0 : index
      %187 = vector.load %arg2[%c0_95, %c0_96, %c0_97] : memref<2x8x32xf32, #tpu.memory_space<vmem>>, vector<2x8x32xf32>
      %c0_98 = arith.constant 0 : index
      %c0_99 = arith.constant 0 : index
      %c0_100 = arith.constant 0 : index
      %188 = vector.load %arg18[%c0_98, %c0_99, %c0_100] : memref<2x8x32xf32, #tpu.memory_space<vmem>>, vector<2x8x32xf32>
      tpu.vector_store %arg18[%c0_98, %c0_99, %c0_100], %187 {strides = array<i32>} : memref<2x8x32xf32, #tpu.memory_space<vmem>>, vector<2x8x32xf32>,
    } else {
    }
    %c0 = arith.constant 0 : index
    %c0_1 = arith.constant 0 : index
    %c0_2 = arith.constant 0 : index
    %3 = vector.load %arg18[%c0, %c0_1, %c0_2] : memref<2x8x32xf32, #tpu.memory_space<vmem>>, vector<2x8x32xf32>
    %4 = vector.shape_cast %3 : vector<2x8x32xf32> to vector<16x32xf32>
    %c0_3 = arith.constant 0 : index
    %c0_4 = arith.constant 0 : index
    %c0_5 = arith.constant 0 : index
    %5 = vector.load %arg4[%c0_3, %c0_4, %c0_5] : memref<1x32x96xf32, #tpu.memory_space<vmem>>, vector<1x32x96xf32>
    %6 = vector.shape_cast %5 : vector<1x32x96xf32> to vector<32x96xf32>
    %cst = arith.constant dense<0.000000e+00> : vector<16x96xf32>
    %7 = tpu.matmul %4, %6, %cst {dimension_numbers = #tpu.dot_dimension_numbers<[1], [0], [0], [1], [0, 0, 1, 1], [], []>} : vector<16x32xf32>, vector<32x96xf32>, vector<16x96xf32> -> vector<16x96xf32>
    %c0_6 = arith.constant 0 : index
    %c0_7 = arith.constant 0 : index
    %c0_8 = arith.constant 0 : index
    %8 = vector.load %arg5[%c0_6, %c0_7, %c0_8] : memref<1x1x96xf32, #tpu.memory_space<vmem>>, vector<1x1x96xf32>
    %9 = vector.shape_cast %8 : vector<1x1x96xf32> to vector<1x96xf32>
    %10 = vector.broadcast %9 : vector<1x96xf32> to vector<16x96xf32>
    %11 = arith.addf %7, %10 : vector<16x96xf32>
    %12 = vector.extract_strided_slice %11 {offsets = [0, 0], sizes = [16, 32], strides = [1, 1]} : vector<16x96xf32> to vector<16x32xf32>
    %cst_9 = arith.constant 0.353553385 : f32
    %13 = vector.broadcast %cst_9 : f32 to vector<16x32xf32>
    %14 = arith.mulf %12, %13 : vector<16x32xf32>
    %15 = vector.shape_cast %14 : vector<16x32xf32> to vector<2x8x32xf32>
    %16 = vector.extract_strided_slice %11 {offsets = [0, 32], sizes = [16, 32], strides = [1, 1]} : vector<16x96xf32> to vector<16x32xf32>
    %17 = vector.shape_cast %16 : vector<16x32xf32> to vector<2x8x32xf32>
    %18 = vector.extract_strided_slice %11 {offsets = [0, 64], sizes = [16, 32], strides = [1, 1]} : vector<16x96xf32> to vector<16x32xf32>
    %19 = vector.shape_cast %18 : vector<16x32xf32> to vector<2x8x32xf32>
    %c0_10 = arith.constant 0 : index
    %c0_11 = arith.constant 0 : index
    %c0_12 = arith.constant 0 : index
    %20 = vector.load %arg3[%c0_10, %c0_11, %c0_12] : memref<2x1x8xf32, #tpu.memory_space<vmem>>, vector<2x1x8xf32>
    %cst_13 = arith.constant 0.000000e+00 : f32
    %21 = vector.broadcast %cst_13 : f32 to vector<2x8x8xf32>
    %22 = vector.extract_strided_slice %15 {offsets = [0, 0, 0], sizes = [2, 8, 8], strides = [1, 1, 1]} : vector<2x8x32xf32> to vector<2x8x8xf32>
    %23 = vector.extract_strided_slice %17 {offsets = [0, 0, 0], sizes = [2, 8, 8], strides = [1, 1, 1]} : vector<2x8x32xf32> to vector<2x8x8xf32>
    "tpu.trace_start"() <{level = 10 : i32, message = "bqd,bkd->bqk"}> : () -> ()
    %cst_14 = arith.constant dense<0.000000e+00> : vector<2x8x8xf32>
    %24 = tpu.matmul %22, %23, %cst_14 {dimension_numbers = #tpu.dot_dimension_numbers<[2], [2], [1], [1], [0, 0, 0, 1, 1, 1], [0], [0]>} : vector<2x8x8xf32>, vector<2x8x8xf32>, vector<2x8x8xf32> -> vector<2x8x8xf32>
    "tpu.trace_stop"() : () -> ()
    %25 = vector.broadcast %20 : vector<2x1x8xf32> to vector<2x8x8xf32>
    %26 = arith.addf %24, %25 : vector<2x8x8xf32>
    %cst_15 = arith.constant dense<0xFF800000> : vector<2x8xf32>
    %27 = vector.multi_reduction <maximumf>, %26, %cst_15 [2] : vector<2x8x8xf32> to vector<2x8xf32>
    %28 = vector.shape_cast %27 : vector<2x8xf32> to vector<2x8x1xf32>
    %29 = vector.broadcast %28 : vector<2x8x1xf32> to vector<2x8x8xf32>
    %30 = arith.subf %26, %29 : vector<2x8x8xf32>
    %31 = math.exp %30 : vector<2x8x8xf32>
    %cst_16 = arith.constant dense<0.000000e+00> : vector<2x8xf32>
    %32 = vector.multi_reduction <add>, %31, %cst_16 [2] : vector<2x8x8xf32> to vector<2x8xf32>
    %33 = vector.shape_cast %32 : vector<2x8xf32> to vector<2x8x1xf32>
    %34 = tpu.reciprocal %33 {approx = true} : vector<2x8x1xf32> -> vector<2x8x1xf32>
    %35 = vector.broadcast %34 : vector<2x8x1xf32> to vector<2x8x8xf32>
    %36 = arith.mulf %31, %35 : vector<2x8x8xf32>
    %37 = arith.addf %21, %36 : vector<2x8x8xf32>
    %38 = vector.extract_strided_slice %19 {offsets = [0, 0, 0], sizes = [2, 8, 8], strides = [1, 1, 1]} : vector<2x8x32xf32> to vector<2x8x8xf32>
    "tpu.trace_start"() <{level = 10 : i32, message = "bqk,bkd->bqd"}> : () -> ()
    %cst_17 = arith.constant dense<0.000000e+00> : vector<2x8x8xf32>
    %39 = tpu.matmul %36, %38, %cst_17 {dimension_numbers = #tpu.dot_dimension_numbers<[2], [1], [1], [2], [0, 0, 0, 1, 1, 2], [0], [0]>} : vector<2x8x8xf32>, vector<2x8x8xf32>, vector<2x8x8xf32> -> vector<2x8x8xf32>
    "tpu.trace_stop"() : () -> ()
    %c0_18 = arith.constant 0 : index
    %c0_19 = arith.constant 0 : index
    %c0_20 = arith.constant 0 : index
    %40 = vector.load %arg19[%c0_18, %c0_19, %c0_20] : memref<2x8x32xf32, #tpu.memory_space<vmem>>, vector<2x8x8xf32>
    tpu.vector_store %arg19[%c0_18, %c0_19, %c0_20], %39 {strides = array<i32>} : memref<2x8x32xf32, #tpu.memory_space<vmem>>, vector<2x8x8xf32>,
    %41 = vector.extract_strided_slice %15 {offsets = [0, 0, 8], sizes = [2, 8, 8], strides = [1, 1, 1]} : vector<2x8x32xf32> to vector<2x8x8xf32>
    %42 = vector.extract_strided_slice %17 {offsets = [0, 0, 8], sizes = [2, 8, 8], strides = [1, 1, 1]} : vector<2x8x32xf32> to vector<2x8x8xf32>
    "tpu.trace_start"() <{level = 10 : i32, message = "bqd,bkd->bqk"}> : () -> ()
    %cst_21 = arith.constant dense<0.000000e+00> : vector<2x8x8xf32>
    %43 = tpu.matmul %41, %42, %cst_21 {dimension_numbers = #tpu.dot_dimension_numbers<[2], [2], [1], [1], [0, 0, 0, 1, 1, 1], [0], [0]>} : vector<2x8x8xf32>, vector<2x8x8xf32>, vector<2x8x8xf32> -> vector<2x8x8xf32>
    "tpu.trace_stop"() : () -> ()
    %44 = vector.broadcast %20 : vector<2x1x8xf32> to vector<2x8x8xf32>
    %45 = arith.addf %43, %44 : vector<2x8x8xf32>
    %cst_22 = arith.constant dense<0xFF800000> : vector<2x8xf32>
    %46 = vector.multi_reduction <maximumf>, %45, %cst_22 [2] : vector<2x8x8xf32> to vector<2x8xf32>
    %47 = vector.shape_cast %46 : vector<2x8xf32> to vector<2x8x1xf32>
    %48 = vector.broadcast %47 : vector<2x8x1xf32> to vector<2x8x8xf32>
    %49 = arith.subf %45, %48 : vector<2x8x8xf32>
    %50 = math.exp %49 : vector<2x8x8xf32>
    %cst_23 = arith.constant dense<0.000000e+00> : vector<2x8xf32>
    %51 = vector.multi_reduction <add>, %50, %cst_23 [2] : vector<2x8x8xf32> to vector<2x8xf32>
    %52 = vector.shape_cast %51 : vector<2x8xf32> to vector<2x8x1xf32>
    %53 = tpu.reciprocal %52 {approx = true} : vector<2x8x1xf32> -> vector<2x8x1xf32>
    %54 = vector.broadcast %53 : vector<2x8x1xf32> to vector<2x8x8xf32>
    %55 = arith.mulf %50, %54 : vector<2x8x8xf32>
    %56 = arith.addf %37, %55 : vector<2x8x8xf32>
    %57 = vector.extract_strided_slice %19 {offsets = [0, 0, 8], sizes = [2, 8, 8], strides = [1, 1, 1]} : vector<2x8x32xf32> to vector<2x8x8xf32>
    "tpu.trace_start"() <{level = 10 : i32, message = "bqk,bkd->bqd"}> : () -> ()
    %cst_24 = arith.constant dense<0.000000e+00> : vector<2x8x8xf32>
    %58 = tpu.matmul %55, %57, %cst_24 {dimension_numbers = #tpu.dot_dimension_numbers<[2], [1], [1], [2], [0, 0, 0, 1, 1, 2], [0], [0]>} : vector<2x8x8xf32>, vector<2x8x8xf32>, vector<2x8x8xf32> -> vector<2x8x8xf32>
    "tpu.trace_stop"() : () -> ()
    %c0_25 = arith.constant 0 : index
    %c0_26 = arith.constant 0 : index
    %c8 = arith.constant 8 : index
    %59 = vector.load %arg19[%c0_25, %c0_26, %c8] : memref<2x8x32xf32, #tpu.memory_space<vmem>>, vector<2x8x8xf32>
    tpu.vector_store %arg19[%c0_25, %c0_26, %c8], %58 {strides = array<i32>} : memref<2x8x32xf32, #tpu.memory_space<vmem>>, vector<2x8x8xf32>,
    %60 = vector.extract_strided_slice %15 {offsets = [0, 0, 16], sizes = [2, 8, 8], strides = [1, 1, 1]} : vector<2x8x32xf32> to vector<2x8x8xf32>
    %61 = vector.extract_strided_slice %17 {offsets = [0, 0, 16], sizes = [2, 8, 8], strides = [1, 1, 1]} : vector<2x8x32xf32> to vector<2x8x8xf32>
    "tpu.trace_start"() <{level = 10 : i32, message = "bqd,bkd->bqk"}> : () -> ()
    %cst_27 = arith.constant dense<0.000000e+00> : vector<2x8x8xf32>
    %62 = tpu.matmul %60, %61, %cst_27 {dimension_numbers = #tpu.dot_dimension_numbers<[2], [2], [1], [1], [0, 0, 0, 1, 1, 1], [0], [0]>} : vector<2x8x8xf32>, vector<2x8x8xf32>, vector<2x8x8xf32> -> vector<2x8x8xf32>
    "tpu.trace_stop"() : () -> ()
    %63 = vector.broadcast %20 : vector<2x1x8xf32> to vector<2x8x8xf32>
    %64 = arith.addf %62, %63 : vector<2x8x8xf32>
    %cst_28 = arith.constant dense<0xFF800000> : vector<2x8xf32>
    %65 = vector.multi_reduction <maximumf>, %64, %cst_28 [2] : vector<2x8x8xf32> to vector<2x8xf32>
    %66 = vector.shape_cast %65 : vector<2x8xf32> to vector<2x8x1xf32>
    %67 = vector.broadcast %66 : vector<2x8x1xf32> to vector<2x8x8xf32>
    %68 = arith.subf %64, %67 : vector<2x8x8xf32>
    %69 = math.exp %68 : vector<2x8x8xf32>
    %cst_29 = arith.constant dense<0.000000e+00> : vector<2x8xf32>
    %70 = vector.multi_reduction <add>, %69, %cst_29 [2] : vector<2x8x8xf32> to vector<2x8xf32>
    %71 = vector.shape_cast %70 : vector<2x8xf32> to vector<2x8x1xf32>
    %72 = tpu.reciprocal %71 {approx = true} : vector<2x8x1xf32> -> vector<2x8x1xf32>
    %73 = vector.broadcast %72 : vector<2x8x1xf32> to vector<2x8x8xf32>
    %74 = arith.mulf %69, %73 : vector<2x8x8xf32>
    %75 = arith.addf %56, %74 : vector<2x8x8xf32>
    %76 = vector.extract_strided_slice %19 {offsets = [0, 0, 16], sizes = [2, 8, 8], strides = [1, 1, 1]} : vector<2x8x32xf32> to vector<2x8x8xf32>
    "tpu.trace_start"() <{level = 10 : i32, message = "bqk,bkd->bqd"}> : () -> ()
    %cst_30 = arith.constant dense<0.000000e+00> : vector<2x8x8xf32>
    %77 = tpu.matmul %74, %76, %cst_30 {dimension_numbers = #tpu.dot_dimension_numbers<[2], [1], [1], [2], [0, 0, 0, 1, 1, 2], [0], [0]>} : vector<2x8x8xf32>, vector<2x8x8xf32>, vector<2x8x8xf32> -> vector<2x8x8xf32>
    "tpu.trace_stop"() : () -> ()
    %c0_31 = arith.constant 0 : index
    %c0_32 = arith.constant 0 : index
    %c16 = arith.constant 16 : index
    %78 = vector.load %arg19[%c0_31, %c0_32, %c16] : memref<2x8x32xf32, #tpu.memory_space<vmem>>, vector<2x8x8xf32>
    tpu.vector_store %arg19[%c0_31, %c0_32, %c16], %77 {strides = array<i32>} : memref<2x8x32xf32, #tpu.memory_space<vmem>>, vector<2x8x8xf32>,
    %79 = vector.extract_strided_slice %15 {offsets = [0, 0, 24], sizes = [2, 8, 8], strides = [1, 1, 1]} : vector<2x8x32xf32> to vector<2x8x8xf32>
    %80 = vector.extract_strided_slice %17 {offsets = [0, 0, 24], sizes = [2, 8, 8], strides = [1, 1, 1]} : vector<2x8x32xf32> to vector<2x8x8xf32>
    "tpu.trace_start"() <{level = 10 : i32, message = "bqd,bkd->bqk"}> : () -> ()
    %cst_33 = arith.constant dense<0.000000e+00> : vector<2x8x8xf32>
    %81 = tpu.matmul %79, %80, %cst_33 {dimension_numbers = #tpu.dot_dimension_numbers<[2], [2], [1], [1], [0, 0, 0, 1, 1, 1], [0], [0]>} : vector<2x8x8xf32>, vector<2x8x8xf32>, vector<2x8x8xf32> -> vector<2x8x8xf32>
    "tpu.trace_stop"() : () -> ()
    %82 = vector.broadcast %20 : vector<2x1x8xf32> to vector<2x8x8xf32>
    %83 = arith.addf %81, %82 : vector<2x8x8xf32>
    %cst_34 = arith.constant dense<0xFF800000> : vector<2x8xf32>
    %84 = vector.multi_reduction <maximumf>, %83, %cst_34 [2] : vector<2x8x8xf32> to vector<2x8xf32>
    %85 = vector.shape_cast %84 : vector<2x8xf32> to vector<2x8x1xf32>
    %86 = vector.broadcast %85 : vector<2x8x1xf32> to vector<2x8x8xf32>
    %87 = arith.subf %83, %86 : vector<2x8x8xf32>
    %88 = math.exp %87 : vector<2x8x8xf32>
    %cst_35 = arith.constant dense<0.000000e+00> : vector<2x8xf32>
    %89 = vector.multi_reduction <add>, %88, %cst_35 [2] : vector<2x8x8xf32> to vector<2x8xf32>
    %90 = vector.shape_cast %89 : vector<2x8xf32> to vector<2x8x1xf32>
    %91 = tpu.reciprocal %90 {approx = true} : vector<2x8x1xf32> -> vector<2x8x1xf32>
    %92 = vector.broadcast %91 : vector<2x8x1xf32> to vector<2x8x8xf32>
    %93 = arith.mulf %88, %92 : vector<2x8x8xf32>
    %94 = arith.addf %75, %93 : vector<2x8x8xf32>
    %95 = vector.extract_strided_slice %19 {offsets = [0, 0, 24], sizes = [2, 8, 8], strides = [1, 1, 1]} : vector<2x8x32xf32> to vector<2x8x8xf32>
    "tpu.trace_start"() <{level = 10 : i32, message = "bqk,bkd->bqd"}> : () -> ()
    %cst_36 = arith.constant dense<0.000000e+00> : vector<2x8x8xf32>
    %96 = tpu.matmul %93, %95, %cst_36 {dimension_numbers = #tpu.dot_dimension_numbers<[2], [1], [1], [2], [0, 0, 0, 1, 1, 2], [0], [0]>} : vector<2x8x8xf32>, vector<2x8x8xf32>, vector<2x8x8xf32> -> vector<2x8x8xf32>
    "tpu.trace_stop"() : () -> ()
    %c0_37 = arith.constant 0 : index
    %c0_38 = arith.constant 0 : index
    %c24 = arith.constant 24 : index
    %97 = vector.load %arg19[%c0_37, %c0_38, %c24] : memref<2x8x32xf32, #tpu.memory_space<vmem>>, vector<2x8x8xf32>
    tpu.vector_store %arg19[%c0_37, %c0_38, %c24], %96 {strides = array<i32>} : memref<2x8x32xf32, #tpu.memory_space<vmem>>, vector<2x8x8xf32>,
    %cst_39 = arith.constant 2.500000e-01 : f32
    %98 = vector.broadcast %cst_39 : f32 to vector<2x8x8xf32>
    %99 = arith.mulf %94, %98 : vector<2x8x8xf32>
    %c0_40 = arith.constant 0 : index
    %c0_41 = arith.constant 0 : index
    %c0_42 = arith.constant 0 : index
    %c0_43 = arith.constant 0 : index
    %100 = vector.load %arg17[%c0_40, %c0_41, %c0_42, %c0_43] : memref<1x2x8x8xf32, #tpu.memory_space<vmem>>, vector<1x2x8x8xf32>
    %101 = vector.shape_cast %100 : vector<1x2x8x8xf32> to vector<2x8x8xf32>
    %102 = vector.shape_cast %99 : vector<2x8x8xf32> to vector<1x2x8x8xf32>
    tpu.vector_store %arg17[%c0_40, %c0_41, %c0_42, %c0_43], %102 {strides = array<i32>} : memref<1x2x8x8xf32, #tpu.memory_space<vmem>>, vector<1x2x8x8xf32>,
    %c0_44 = arith.constant 0 : index
    %c0_45 = arith.constant 0 : index
    %c0_46 = arith.constant 0 : index
    %103 = vector.load %arg19[%c0_44, %c0_45, %c0_46] : memref<2x8x32xf32, #tpu.memory_space<vmem>>, vector<2x8x32xf32>
    %104 = vector.shape_cast %103 : vector<2x8x32xf32> to vector<16x32xf32>
    %c0_47 = arith.constant 0 : index
    %c0_48 = arith.constant 0 : index
    %c0_49 = arith.constant 0 : index
    %105 = vector.load %arg6[%c0_47, %c0_48, %c0_49] : memref<1x32x32xf32, #tpu.memory_space<vmem>>, vector<1x32x32xf32>
    %106 = vector.shape_cast %105 : vector<1x32x32xf32> to vector<32x32xf32>
    %cst_50 = arith.constant dense<0.000000e+00> : vector<16x32xf32>
    %107 = tpu.matmul %104, %106, %cst_50 {dimension_numbers = #tpu.dot_dimension_numbers<[1], [0], [0], [1], [0, 0, 1, 1], [], []>} : vector<16x32xf32>, vector<32x32xf32>, vector<16x32xf32> -> vector<16x32xf32>
    %c0_51 = arith.constant 0 : index
    %c0_52 = arith.constant 0 : index
    %c0_53 = arith.constant 0 : index
    %108 = vector.load %arg7[%c0_51, %c0_52, %c0_53] : memref<1x1x32xf32, #tpu.memory_space<vmem>>, vector<1x1x32xf32>
    %109 = vector.shape_cast %108 : vector<1x1x32xf32> to vector<1x32xf32>
    %110 = vector.broadcast %109 : vector<1x32xf32> to vector<16x32xf32>
    %111 = arith.addf %107, %110 : vector<16x32xf32>
    %112 = arith.addf %4, %111 : vector<16x32xf32>
    %cst_54 = arith.constant dense<0.000000e+00> : vector<16xf32>
    %113 = vector.multi_reduction <add>, %112, %cst_54 [1] : vector<16x32xf32> to vector<16xf32>
    %114 = vector.shape_cast %113 : vector<16xf32> to vector<16x1xf32>
    %cst_55 = arith.constant 3.200000e+01 : f32
    %115 = vector.broadcast %cst_55 : f32 to vector<16x1xf32>
    %116 = arith.divf %114, %115 : vector<16x1xf32>
    %117 = vector.broadcast %116 : vector<16x1xf32> to vector<16x32xf32>
    %118 = arith.subf %112, %117 : vector<16x32xf32>
    %119 = arith.mulf %118, %118 : vector<16x32xf32>
    %cst_56 = arith.constant dense<0.000000e+00> : vector<16xf32>
    %120 = vector.multi_reduction <add>, %119, %cst_56 [1] : vector<16x32xf32> to vector<16xf32>
    %121 = vector.shape_cast %120 : vector<16xf32> to vector<16x1xf32>
    %cst_57 = arith.constant 3.200000e+01 : f32
    %122 = vector.broadcast %cst_57 : f32 to vector<16x1xf32>
    %123 = arith.divf %121, %122 : vector<16x1xf32>
    %124 = vector.broadcast %116 : vector<16x1xf32> to vector<16x32xf32>
    %125 = arith.subf %112, %124 : vector<16x32xf32>
    %cst_58 = arith.constant 9.99999974E-6 : f32
    %126 = vector.broadcast %cst_58 : f32 to vector<16x1xf32>
    %127 = arith.addf %123, %126 : vector<16x1xf32>
    %128 = math.rsqrt %127 : vector<16x1xf32>
    %129 = vector.broadcast %128 : vector<16x1xf32> to vector<16x32xf32>
    %130 = arith.mulf %125, %129 : vector<16x32xf32>
    %c0_59 = arith.constant 0 : index
    %c0_60 = arith.constant 0 : index
    %c0_61 = arith.constant 0 : index
    %131 = vector.load %arg8[%c0_59, %c0_60, %c0_61] : memref<1x1x32xf32, #tpu.memory_space<vmem>>, vector<1x1x32xf32>
    %132 = vector.shape_cast %131 : vector<1x1x32xf32> to vector<1x32xf32>
    %133 = vector.broadcast %132 : vector<1x32xf32> to vector<16x32xf32>
    %134 = arith.mulf %130, %133 : vector<16x32xf32>
    %c0_62 = arith.constant 0 : index
    %c0_63 = arith.constant 0 : index
    %c0_64 = arith.constant 0 : index
    %135 = vector.load %arg9[%c0_62, %c0_63, %c0_64] : memref<1x1x32xf32, #tpu.memory_space<vmem>>, vector<1x1x32xf32>
    %136 = vector.shape_cast %135 : vector<1x1x32xf32> to vector<1x32xf32>
    %137 = vector.broadcast %136 : vector<1x32xf32> to vector<16x32xf32>
    %138 = arith.addf %134, %137 : vector<16x32xf32>
    %c0_65 = arith.constant 0 : index
    %c0_66 = arith.constant 0 : index
    %c0_67 = arith.constant 0 : index
    %139 = vector.load %arg10[%c0_65, %c0_66, %c0_67] : memref<1x32x64xf32, #tpu.memory_space<vmem>>, vector<1x32x64xf32>
    %140 = vector.shape_cast %139 : vector<1x32x64xf32> to vector<32x64xf32>
    %cst_68 = arith.constant dense<0.000000e+00> : vector<16x64xf32>
    %141 = tpu.matmul %138, %140, %cst_68 {dimension_numbers = #tpu.dot_dimension_numbers<[1], [0], [0], [1], [0, 0, 1, 1], [], []>} : vector<16x32xf32>, vector<32x64xf32>, vector<16x64xf32> -> vector<16x64xf32>
    %c0_69 = arith.constant 0 : index
    %c0_70 = arith.constant 0 : index
    %c0_71 = arith.constant 0 : index
    %142 = vector.load %arg11[%c0_69, %c0_70, %c0_71] : memref<1x1x64xf32, #tpu.memory_space<vmem>>, vector<1x1x64xf32>
    %143 = vector.shape_cast %142 : vector<1x1x64xf32> to vector<1x64xf32>
    %144 = vector.broadcast %143 : vector<1x64xf32> to vector<16x64xf32>
    %145 = arith.addf %141, %144 : vector<16x64xf32>
    %cst_72 = arith.constant 0.000000e+00 : f32
    %146 = vector.broadcast %cst_72 : f32 to vector<16x64xf32>
    %147 = arith.maximumf %145, %146 : vector<16x64xf32>
    %c0_73 = arith.constant 0 : index
    %c0_74 = arith.constant 0 : index
    %c0_75 = arith.constant 0 : index
    %148 = vector.load %arg12[%c0_73, %c0_74, %c0_75] : memref<1x64x32xf32, #tpu.memory_space<vmem>>, vector<1x64x32xf32>
    %149 = vector.shape_cast %148 : vector<1x64x32xf32> to vector<64x32xf32>
    %cst_76 = arith.constant dense<0.000000e+00> : vector<16x32xf32>
    %150 = tpu.matmul %147, %149, %cst_76 {dimension_numbers = #tpu.dot_dimension_numbers<[1], [0], [0], [1], [0, 0, 1, 1], [], []>} : vector<16x64xf32>, vector<64x32xf32>, vector<16x32xf32> -> vector<16x32xf32>
    %c0_77 = arith.constant 0 : index
    %c0_78 = arith.constant 0 : index
    %c0_79 = arith.constant 0 : index
    %151 = vector.load %arg13[%c0_77, %c0_78, %c0_79] : memref<1x1x32xf32, #tpu.memory_space<vmem>>, vector<1x1x32xf32>
    %152 = vector.shape_cast %151 : vector<1x1x32xf32> to vector<1x32xf32>
    %153 = vector.broadcast %152 : vector<1x32xf32> to vector<16x32xf32>
    %154 = arith.addf %150, %153 : vector<16x32xf32>
    %155 = arith.addf %138, %154 : vector<16x32xf32>
    %cst_80 = arith.constant dense<0.000000e+00> : vector<16xf32>
    %156 = vector.multi_reduction <add>, %155, %cst_80 [1] : vector<16x32xf32> to vector<16xf32>
    %157 = vector.shape_cast %156 : vector<16xf32> to vector<16x1xf32>
    %cst_81 = arith.constant 3.200000e+01 : f32
    %158 = vector.broadcast %cst_81 : f32 to vector<16x1xf32>
    %159 = arith.divf %157, %158 : vector<16x1xf32>
    %160 = vector.broadcast %159 : vector<16x1xf32> to vector<16x32xf32>
    %161 = arith.subf %155, %160 : vector<16x32xf32>
    %162 = arith.mulf %161, %161 : vector<16x32xf32>
    %cst_82 = arith.constant dense<0.000000e+00> : vector<16xf32>
    %163 = vector.multi_reduction <add>, %162, %cst_82 [1] : vector<16x32xf32> to vector<16xf32>
    %164 = vector.shape_cast %163 : vector<16xf32> to vector<16x1xf32>
    %cst_83 = arith.constant 3.200000e+01 : f32
    %165 = vector.broadcast %cst_83 : f32 to vector<16x1xf32>
    %166 = arith.divf %164, %165 : vector<16x1xf32>
    %167 = vector.broadcast %159 : vector<16x1xf32> to vector<16x32xf32>
    %168 = arith.subf %155, %167 : vector<16x32xf32>
    %cst_84 = arith.constant 9.99999974E-6 : f32
    %169 = vector.broadcast %cst_84 : f32 to vector<16x1xf32>
    %170 = arith.addf %166, %169 : vector<16x1xf32>
    %171 = math.rsqrt %170 : vector<16x1xf32>
    %172 = vector.broadcast %171 : vector<16x1xf32> to vector<16x32xf32>
    %173 = arith.mulf %168, %172 : vector<16x32xf32>
    %c0_85 = arith.constant 0 : index
    %c0_86 = arith.constant 0 : index
    %c0_87 = arith.constant 0 : index
    %174 = vector.load %arg14[%c0_85, %c0_86, %c0_87] : memref<1x1x32xf32, #tpu.memory_space<vmem>>, vector<1x1x32xf32>
    %175 = vector.shape_cast %174 : vector<1x1x32xf32> to vector<1x32xf32>
    %176 = vector.broadcast %175 : vector<1x32xf32> to vector<16x32xf32>
    %177 = arith.mulf %173, %176 : vector<16x32xf32>
    %c0_88 = arith.constant 0 : index
    %c0_89 = arith.constant 0 : index
    %c0_90 = arith.constant 0 : index
    %178 = vector.load %arg15[%c0_88, %c0_89, %c0_90] : memref<1x1x32xf32, #tpu.memory_space<vmem>>, vector<1x1x32xf32>
    %179 = vector.shape_cast %178 : vector<1x1x32xf32> to vector<1x32xf32>
    %180 = vector.broadcast %179 : vector<1x32xf32> to vector<16x32xf32>
    %181 = arith.addf %177, %180 : vector<16x32xf32>
    %182 = vector.shape_cast %181 : vector<16x32xf32> to vector<2x8x32xf32>
    %c0_91 = arith.constant 0 : index
    %c0_92 = arith.constant 0 : index
    %c0_93 = arith.constant 0 : index
    %183 = vector.load %arg18[%c0_91, %c0_92, %c0_93] : memref<2x8x32xf32, #tpu.memory_space<vmem>>, vector<2x8x32xf32>
    tpu.vector_store %arg18[%c0_91, %c0_92, %c0_93], %182 {strides = array<i32>} : memref<2x8x32xf32, #tpu.memory_space<vmem>>, vector<2x8x32xf32>,
    %c1_i32 = arith.constant 1 : i32
    %184 = arith.cmpi eq, %arg1, %c1_i32 : i32
    %185 = arith.extui %184 : i1 to i32
    %c0_i32_94 = arith.constant 0 : i32
    %186 = arith.cmpi ne, %185, %c0_i32_94 : i32
    scf.if %186 {
      %c0_95 = arith.constant 0 : index
      %c0_96 = arith.constant 0 : index
      %c0_97 = arith.constant 0 : index
      %187 = vector.load %arg18[%c0_95, %c0_96, %c0_97] : memref<2x8x32xf32, #tpu.memory_space<vmem>>, vector<2x8x32xf32>
      %c0_98 = arith.constant 0 : index
      %c0_99 = arith.constant 0 : index
      %c0_100 = arith.constant 0 : index
      %188 = vector.load %arg16[%c0_98, %c0_99, %c0_100] : memref<2x8x32xf32, #tpu.memory_space<vmem>>, vector<2x8x32xf32>
      tpu.vector_store %arg16[%c0_98, %c0_99, %c0_100], %187 {strides = array<i32>} : memref<2x8x32xf32, #tpu.memory_space<vmem>>, vector<2x8x32xf32>,
    } else {
    }
    return
  }
  func.func @transform_0(%arg0: i32, %arg1: i32) -> (i32, i32, i32) {
    %c0_i32 = arith.constant 0 : i32
    %c0_i32_0 = arith.constant 0 : i32
    %c0_i32_1 = arith.constant 0 : i32
    return %arg0, %c0_i32, %c0_i32_0 : i32, i32, i32
  }
  func.func @transform_1(%arg0: i32, %arg1: i32) -> (i32, i32, i32) {
    %c0_i32 = arith.constant 0 : i32
    %c0_i32_0 = arith.constant 0 : i32
    %c0_i32_1 = arith.constant 0 : i32
    return %arg0, %c0_i32, %c0_i32_0 : i32, i32, i32
  }
  func.func @transform_2(%arg0: i32, %arg1: i32) -> (i32, i32, i32) {
    %c0_i32 = arith.constant 0 : i32
    %c0_i32_0 = arith.constant 0 : i32
    %c0_i32_1 = arith.constant 0 : i32
    return %arg1, %c0_i32, %c0_i32_0 : i32, i32, i32
  }
  func.func @transform_3(%arg0: i32, %arg1: i32) -> (i32, i32, i32) {
    %c0_i32 = arith.constant 0 : i32
    %c0_i32_0 = arith.constant 0 : i32
    %c0_i32_1 = arith.constant 0 : i32
    return %arg1, %c0_i32, %c0_i32_0 : i32, i32, i32
  }
  func.func @transform_4(%arg0: i32, %arg1: i32) -> (i32, i32, i32) {
    %c0_i32 = arith.constant 0 : i32
    %c0_i32_0 = arith.constant 0 : i32
    %c0_i32_1 = arith.constant 0 : i32
    return %arg1, %c0_i32, %c0_i32_0 : i32, i32, i32
  }
  func.func @transform_5(%arg0: i32, %arg1: i32) -> (i32, i32, i32) {
    %c0_i32 = arith.constant 0 : i32
    %c0_i32_0 = arith.constant 0 : i32
    %c0_i32_1 = arith.constant 0 : i32
    return %arg1, %c0_i32, %c0_i32_0 : i32, i32, i32
  }
  func.func @transform_6(%arg0: i32, %arg1: i32) -> (i32, i32, i32) {
    %c0_i32 = arith.constant 0 : i32
    %c0_i32_0 = arith.constant 0 : i32
    %c0_i32_1 = arith.constant 0 : i32
    return %arg1, %c0_i32, %c0_i32_0 : i32, i32, i32
  }
  func.func @transform_7(%arg0: i32, %arg1: i32) -> (i32, i32, i32) {
    %c0_i32 = arith.constant 0 : i32
    %c0_i32_0 = arith.constant 0 : i32
    %c0_i32_1 = arith.constant 0 : i32
    return %arg1, %c0_i32, %c0_i32_0 : i32, i32, i32
  }
  func.func @transform_8(%arg0: i32, %arg1: i32) -> (i32, i32, i32) {
    %c0_i32 = arith.constant 0 : i32
    %c0_i32_0 = arith.constant 0 : i32
    %c0_i32_1 = arith.constant 0 : i32
    return %arg1, %c0_i32, %c0_i32_0 : i32, i32, i32
  }
  func.func @transform_9(%arg0: i32, %arg1: i32) -> (i32, i32, i32) {
    %c0_i32 = arith.constant 0 : i32
    %c0_i32_0 = arith.constant 0 : i32
    %c0_i32_1 = arith.constant 0 : i32
    return %arg1, %c0_i32, %c0_i32_0 : i32, i32, i32
  }
  func.func @transform_10(%arg0: i32, %arg1: i32) -> (i32, i32, i32) {
    %c0_i32 = arith.constant 0 : i32
    %c0_i32_0 = arith.constant 0 : i32
    %c0_i32_1 = arith.constant 0 : i32
    return %arg1, %c0_i32, %c0_i32_0 : i32, i32, i32
  }
  func.func @transform_11(%arg0: i32, %arg1: i32) -> (i32, i32, i32) {
    %c0_i32 = arith.constant 0 : i32
    %c0_i32_0 = arith.constant 0 : i32
    %c0_i32_1 = arith.constant 0 : i32
    return %arg1, %c0_i32, %c0_i32_0 : i32, i32, i32
  }
  func.func @transform_12(%arg0: i32, %arg1: i32) -> (i32, i32, i32) {
    %c0_i32 = arith.constant 0 : i32
    %c0_i32_0 = arith.constant 0 : i32
    %c0_i32_1 = arith.constant 0 : i32
    return %arg1, %c0_i32, %c0_i32_0 : i32, i32, i32
  }
  func.func @transform_13(%arg0: i32, %arg1: i32) -> (i32, i32, i32) {
    %c0_i32 = arith.constant 0 : i32
    %c0_i32_0 = arith.constant 0 : i32
    %c0_i32_1 = arith.constant 0 : i32
    return %arg1, %c0_i32, %c0_i32_0 : i32, i32, i32
  }
  func.func @transform_14(%arg0: i32, %arg1: i32) -> (i32, i32, i32) {
    %c0_i32 = arith.constant 0 : i32
    %c0_i32_0 = arith.constant 0 : i32
    %c0_i32_1 = arith.constant 0 : i32
    return %arg0, %c0_i32, %c0_i32_0 : i32, i32, i32
  }
  func.func @transform_15(%arg0: i32, %arg1: i32) -> (i32, i32, i32, i32) {
    %c0_i32 = arith.constant 0 : i32
    %c0_i32_0 = arith.constant 0 : i32
    %c0_i32_1 = arith.constant 0 : i32
    return %arg1, %arg0, %c0_i32, %c0_i32_0 : i32, i32, i32, i32
  }
}

</mosaic_0001>

<bundles_post_ra>
// kernel: tpu_custom_call.1
= control target key start
LH: loop header
LB: loop body
LE: loop exit
PB: predicated region body
PF: predicated region fallthrough
CT: control target
= control target key end

     0   :  { %s4048_s0 = inlined_call_operand.hbm [shape: f32[2,8,32], index: 0, kind: input, shape index: {}]   ;;  %s4049_s1 = inlined_call_operand.vmem [shape: f32[2,1,8], index: 1, kind: input, shape index: {}]   ;;  %s4050_s2 = inlined_call_operand.vmem [shape: f32[2,32,96], index: 2, kind: input, shape index: {}]   ;;  %s4051_s3 = inlined_call_operand.vmem [shape: f32[2,1,96], index: 3, kind: input, shape index: {}]   ;;  %s4052_s4 = inlined_call_operand.vmem [shape: f32[2,32,32], index: 4, kind: input, shape index: {}]   ;;  %s4053_s5 = inlined_call_operand.vmem [shape: f32[2,1,32], index: 5, kind: input, shape index: {}]   ;;  %s4054_s6 = inlined_call_operand.vmem [shape: f32[2,1,32], index: 6, kind: input, shape index: {}]   ;;  %s4055_s7 = inlined_call_operand.vmem [shape: f32[2,1,32], index: 7, kind: input, shape index: {}]   ;;  %s4056_s8 = inlined_call_operand.vmem [shape: f32[2,32,64], index: 8, kind: input, shape index: {}]   ;;  %s4057_s9 = inlined_call_operand.vmem [shape: f32[2,1,64], index: 9, kind: input, shape index: {}]   ;;  %s4058_s10 = inlined_call_operand.vmem [shape: f32[2,64,32], index: 10, kind: input, shape index: {}]   ;;  %s4059_s11 = inlined_call_operand.vmem [shape: f32[2,1,32], index: 11, kind: input, shape index: {}]   ;;  %s4060_s12 = inlined_call_operand.vmem [shape: f32[2,1,32], index: 12, kind: input, shape index: {}]   ;;  %s4061_s13 = inlined_call_operand.vmem [shape: f32[2,1,32], index: 13, kind: input, shape index: {}]   ;;  %s4062_s14 = inlined_call_operand.hbm [shape: f32[2,8,32], index: 14, kind: output, shape index: {0}]   ;;  %s4063_s15 = inlined_call_operand.hbm [shape: f32[2,2,8,8], index: 15, kind: output, shape index: {1}]  }
   0x1   :  { %4087 = sst [smem:[#allocation24_spill]] %s4048_s0 }
   0x2   :  { %4088 = sst [smem:[#allocation25_spill]] %s4049_s1 }
   0x3   :  { %4089 = sst [smem:[#allocation26_spill]] %s4050_s2 }
   0x4   :  { %4090 = sst [smem:[#allocation27_spill]] %s4052_s4 }
   0x5   :  { %4091 = sst [smem:[#allocation28_spill]] %s4062_s14 }
   0x6   :  { %4092 = sst [smem:[#allocation29_spill]] %s4063_s15 }
   0x7   :  { %21 = vsyncpa [#allocation5], 0 }
   0x8   :  { %22 = vsyncpa [#allocation6], 0 }
   0x9   :  { %23 = vsyncpa [#allocation9], 0 }
   0xa   :  { %25 = vsyncpa [#allocation9 + $0x1], 0  ;;  %s3539_s18 = smov 0   ;;  %s3541_s19 = smov 0  }
   0xb   :  { %s3543_s20 = smov 0   ;;  %s3545_s21 = smov 0  }
   0xc   :  { %s3547_s22 = smov 0   ;;  %s3549_s23 = smov 0  }
   0xd LB: > { %4093 = sst [smem:[#allocation13_spill]] %s3415_s18  ;;  %s2858_s24 = sadd.s32 4294967295, %s3435_s23   ;;  %s3435_s23 = sphi %s3549_s23, %s31_s23   ;;  %s3431_s22 = sphi %s3547_s22, %s4139_s22   ;;  %s3427_s21 = sphi %s3545_s21, %s4138_s21   ;;  %s3423_s20 = sphi %s3543_s20, %s4137_s20   ;;  %s3419_s19 = sphi %s3541_s19, %s4136_s19   ;;  %s3415_s18 = sphi %s3539_s18, %s4135_s18  }
   0xe   : > { %4094 = sst [smem:[#allocation14_spill]] %s3419_s19  ;;  %s2859_s25 = sadd.s32 4294967294, %s3435_s23  }
   0xf   : > { %4095 = sst [smem:[#allocation15_spill]] %s3423_s20  ;;  %s40_s26 = sadd.s32 1, %s3431_s22 }
  0x10   : > { %4096 = sst [smem:[#allocation16_spill]] %s3427_s21  ;;  %s442_s27 = sadd.s32 1, %s3423_s20 }
  0x11   : > { %4097 = sst [smem:[#allocation17_spill]] %s3431_s22  ;;  %p41_p0 = scmp.ge.s32.totalorder %s40_s26, 2 }
  0x12   : > { %4098 = sst [smem:[#allocation18_spill]] %s3435_s23  ;;  %p452_p1 = scmp.ne.s32.totalorder %s3423_s20, %s3419_s19 }
  0x13   : > { %p3575_p2 = scmp.eq.s32.totalorder %s2858_s24, 1  ;;  %p458_p3 = scmp.ne.s32.totalorder %s3419_s19, %s3415_s18 }
  0x14   : > { %s4141_s26 = smov (%p41_p0, %s40_s26), 0  ;;  %p459_p5 = scmp.eq.s32.totalorder %s2859_s25, 1 }
  0x15   : > { %s4099_s28 = scalar_select %p3575_p2, 1, 0 }
  0x16   : > { %4101 = sst [smem:[#allocation20_spill]] %s4141_s26  ;;  %p3585_p4 = por %p3575_p2, %p452_p1 }
  0x17   : > { %4100 = sst [smem:[#allocation19_spill]] %s4099_s28  ;;  %s437_s30 = ssub.s32 %s3431_s22, %s4141_s26 }
  0x18   : > { %s4102_s29 = scalar_select %p3585_p4, 1, 0 }
  0x19   : > { %p2860_p6 = scmp.ge.s32.totalorder %s3435_s23, 1  ;;  %p440_p7 = scmp.eq.s32.totalorder %s437_s30, 0 }
  0x1a   : > { %4103 = sst [smem:[#allocation21_spill]] %s4102_s29  ;;  %p3592_p8 = por %p459_p5, %p458_p3 }
  0x1b   : > { %p466_p9 = scmp.lt.s32.totalorder %s3435_s23, 3  ;;  %p3604_p11 = scmp.eq.s32.totalorder %s2858_s24, 0 }
  0x1c   : > { %s4104_s16 = scalar_select %p3592_p8, 1, 0 }
  0x1d   : > { %s3598_s17 = scalar_select %p440_p7, %s3423_s20, %s442_s27  }
  0x1e   : > { %4105 = sst [smem:[#allocation22_spill]] %s4104_s16  ;;  %p3600_p10 = pnand %p2860_p6, %p466_p9 }
  0x1f   : > { %4106 = sst [smem:[#allocation23_spill]] %s3598_s17  ;;  %s3437_s25 = smov [#allocation4]  }
  0x20   : > { %s4107_s18 = scalar_select %p3600_p10, 1, 0 }
  0x21   : > { %s4108_s15 = scalar_select %p3604_p11, 1, 0 }
  0x22   : > { %p3173_p12 = pneg %p3600_p10  ;;  %s481_s30 = sshll.u32 %s3437_s25, 4  ;;  %s482_s30 = int_to_ptr.vmem [resolvable:$true] %s481_s30 }
  0x23   : > { %s4110_s0 = sld [smem:[#allocation24_spill]] }
  0x24   : > { %p3612_p13 = pnand %p3604_p11, %p3173_p12 }
  0x26   : > { %p3297_p1 = pneg %p3612_p13 }
  0x29   : > { %s3295_s17 = scalar_lea.hbm %s4110_s0, 256 }
  0x2a   : > { %p3296_p0 = scmp.ne.s32.totalorder %s4110_s0, %s3295_s17  ;;  %p3302_p6 = scmp.lt.u32.totalorder %s3295_s17, %s4110_s0 }
  0x2c   : > { %p3298_p3 = pnand %p3297_p1, %p3296_p0 }
  0x2e   : > { %p3299_p5 = pneg %p3298_p3 }
  0x30   : > { %p3304_p7 = pnand %p3302_p6, %p3299_p5 }
  0x32   : > { %3307 = shalt.err (!%p3304_p7)
}
  0x33   : > { %s3308_s23 = scalar_lea.vmem %s482_s30, 256  ;;  %p3316_p4 = scmp.lt.s32.totalorder %s482_s30, %s482_s30 }
  0x34   : > { %p3309_p9 = scmp.ne.s32.totalorder %s482_s30, %s3308_s23  ;;  %p3317_p2 = scmp.lt.s32.totalorder %s3308_s23, %s3308_s23 }
  0x36   : > { %p3311_p12 = pnand %p3309_p9, %p3297_p1  ;;  %p3318_p11 = por %p3317_p2, %p3316_p4 }
  0x38   : > { %p3312_p8 = pneg %p3311_p12 }
  0x3a   : > { %p3319_p10 = pnand %p3318_p11, %p3312_p8 }
  0x3c   : > { %3322 = shalt.err (!%p3319_p10)
}
  0x3d   : > { %s3438_s20 = smov 128   ;;  %s3439_s22 = smov 8  }
  0x3e   : > { %3176 = dma.hbm_to_vmem [thread:$0]  (!%p3612_p13), %s4110_s0, 256, %s482_s30, [#allocation5], %s3438_s20, %s3438_s20, %s3439_s22  }
  0x3f   : > { %p4111_p0 = scmp.ne.s32.totalorder %s4107_s18, 0 }
  0x40   : > { %p4112_p3 = scmp.ne.s32.totalorder (!%p4111_p0), %s4108_s15, 0 }
  0x41   : > { %585 = sbr.rel (%p4111_p0) target bundleno = 4254 (0x109e), region = 76 }
  0x48   : > { %3402 = dma.done.wait (%p4112_p3), [#allocation5], 256  }
  0x49   : > { %3404 = vsyncadd (%p4112_p3), [#allocation5], 4294967040  ;;  %s4078_s23 = sand.u32 1, %s3419_s19   ;;  %p682_p2 = scmp.lt.s32.totalorder %s3427_s21, 1 }
  0x4a   : > { %s2866_s26 = sshll.u32 %s4078_s23, 4  ;;  %s4113_s2 = sld [smem:[#allocation26_spill]] }
  0x4b   : > { %s3643_s16 = scalar_select %p682_p2, %s3427_s21, 1 }
  0x4c   : > { %s4114_s4 = sld [smem:[#allocation27_spill]]  ;;  %s3697_s27 = scalar_lea.vmem [#allocation8], %s2866_s26 }
  0x4d   : > { %s2926_s15 = sshll.u32 %s3643_s16, 5  ;;  %s719_s21 = scalar_lea.vmem %s4059_s11, %s3643_s16 }
  0x4e   : > { %s3673_s20 = scalar_lea.vmem %s4056_s8, %s2926_s15  ;;  %s722_s30 = scalar_lea.vmem %s4060_s12, %s3643_s16 }
  0x4f   : > { %s725_s1 = scalar_lea.vmem %s4061_s13, %s3643_s16  ;;  %s4115_s24 = sld [smem:[#allocation16_spill]] }
  0x50   : > { %s686_s22 = scalar_lea.vmem %s4113_s2, %s2926_s15  ;;  %s711_s2 = scalar_lea.vmem %s4057_s9, %s3643_s16 }
  0x52   : > { %s3656_s23 = scalar_lea.vmem %s4114_s4, %s2926_s15  ;;  %s2929_s4 = sshll.u32 %s3643_s16, 6 }
  0x53   : > { %s3683_s19 = scalar_lea.vmem %s4058_s10, %s2929_s4 }
  0x55   : > { %p2875_p4 = scmp.ne.s32.totalorder %s4115_s24, 0 }
  0x56   : > { %v732_v0 = vld [vmem:[#allocation4] sm:$0xff] (!%p2875_p4)  ;;  %vm734_vm0 = vcmask (!%p2875_p4), 261120   ;;  %v733_v1 = vld [vmem:[#allocation4 + $0x8] sm:$0xff] (!%p2875_p4) }
  0x57   : > { %731 = sbr.rel (%p2875_p4) target bundleno = 94 (0x5e), region = 84  ;;  %735 = vst.msk [vmem:[#allocation2] sm:$0xff] (!%p2875_p4), %vm734_vm0, %v732_v0  ;;  %736 = vst.msk [vmem:[#allocation2 + $0x8] sm:$0xff] (!%p2875_p4), %vm734_vm0, %v733_v1 }
  0x5e PF: > { %v739_v2 = vld [vmem:[%s686_s22] sm:$0xff]  ;;  %v740_v3 = vld [vmem:[%s686_s22 + $0x8] sm:$0xff]  ;;  %v741_v4 = vld [vmem:[%s686_s22 + $0x10] sm:$0xff]  ;;  %vm750_vm1 = vcmask 261120   ;;  %v3440_v10 = vmov 0.0   ;;  %vm3441_vm2 = vmmov 0  }
  0x5f   : > { %v3123_v5 = vpack.c.bf16 %v740_v3, %v739_v2  ;;  %v742_v6 = vld [vmem:[%s686_s22 + $0x18] sm:$0xff]  ;;  %v3700_v7 = vld [vmem:[#allocation2] sm:$0xff]  ;;  %v3704_v9 = vld [vmem:[#allocation2 + $0x8] sm:$0xff]  ;;  %3012 = vmatprep.subr.mxu0 %v3440_v10  ;;  %3014 = vmatprep.mubr.msk.f32.mxu0 %vm3441_vm2, %v3440_v10  ;;  %s4116_s22 = scalar_lea.vmem %s4051_s3, %s3643_s16  ;;  %s3442_s17 = smov 96   ;;  %vm851_vm3 = vcmask 64512   ;;  %vm1523_vm4 = vcmask 130112  }
  0x60   : > { %v3127_v8 = vpack.c.bf16 %v742_v6, %v741_v4  ;;  %2999 = vmatprep.mubr.msk.f32.mxu1 %vm750_vm1, %v3700_v7  ;;  %v2876_v11 = vld [vmem:[%s4116_s22] ss:$0 sm:$0xff]  ;;  %s4117_s14 = sld [smem:[#allocation25_spill]]  ;;  %s3443_s15 = smov 64   ;;  %vm1866_vm5 = vcmask 195712   ;;  %vm2209_vm6 = vcmask 261312  }
  0x61   : > { %3124 = vmatprep.subr.bf16.mxu1 %v3123_v5  ;;  %s3444_s25 = smov 88   ;;  %s3445_s24 = smov 120   ;;  %vm2466_vm7 = vcmask 523264  }
  0x62   : > { %3126 = vmatpush3.bf16.msra.mxu1 %v3123_v5  ;;  %s3446_s4 = smov 56   ;;  %s3447_s26 = smov 80  }
  0x63   : > { %3128 = vmatprep.subr.bf16.mxu1 %v3127_v8  ;;  %s3448_s22 = smov 112   ;;  %s3450_s0 = smov 72  }
  0x64   : > { %s3451_s29 = smov 104   ;;  %s3452_s28 = smov 40  }
  0x65   : > { %s3453_s18 = smov 8  }
  0x66   : > { %3130 = vmatpush3.bf16.msra.mxu1 %v3127_v8  ;;  %v3746_v20 = vld [vmem:[%s4117_s14] ss:$0 sm:$0xff]  ;;  %v3752_v24 = vld [vmem:[%s4117_s14 + $0x1] ss:$0 sm:$0xff] }
  0x67   : > { %3002 = vmatprep.subr.mxu1 %v3440_v10 }
  0x69   : > { %3000 = vmatmul.mubr.msk.f32.vlgmr.msra.gmra.mrb[0].mxu1 %vm750_vm1, %v3704_v9 }
  0x6a   : > { %3004 = vmatprep.mubr.msk.f32.mxu1 %vm3441_vm2, %v3440_v10 }
 0x13c   : > { %v3001_v12 = vpop.f32.mrb[0].mxu1 }
 0x13d   : > { %v823_v13 = vpop.f32.mrb[1].mxu1  ;;  %v3722_v15 = vadd.f32 %v3001_v12, %v2876_v11 }
 0x13e   : > { %v3719_v14 = vadd.f32 %v2876_v11, %v823_v13 }
 0x13f   : > { %v3736_v19 = vmul.f32 0.35355338, %v3722_v15 }
 0x140   : > { %849 = vrot.lane.b32.xlu0 %v3719_v14, %s3442_s17  ;;  %v3728_v17 = vmul.f32 0.35355338, %v3719_v14 }
 0x144   : > { %928 = vrot.lane.b32.xlu0 %v3722_v15, %s3442_s17  ;;  %s3449_s17 = smov 48  }
 0x1b2   : > { %v850_v16 = vpop.permute.xlu0 %849 }
 0x1b3   : > { %3003 = vmatpush3.xpose.msk.msra.mxu1 %vm851_vm3, %v850_v16 }
 0x1b4   : > { %3007 = vmatprep.subr.mxu1 %v3440_v10 }
 0x1b6   : > { %v929_v18 = vpop.permute.xlu0 %928  ;;  %3005 = vmatmul.mubr.msk.f32.vlgmr.msra.gmra.mrb[2].mxu1 %vm851_vm3, %v3728_v17 }
 0x1b7   : > { %3008 = vmatpush3.xpose.msk.msra.mxu1 %vm851_vm3, %v929_v18  ;;  %3009 = vmatprep.mubr.msk.f32.mxu1 %vm3441_vm2, %v3440_v10 }
 0x1b8   : > { %3017 = vmatprep.subr.mxu1 %v3440_v10 }
 0x1ba   : > { %3010 = vmatmul.mubr.msk.f32.vlgmr.msra.gmra.mrb[4].mxu1 %vm851_vm3, %v3736_v19 }
 0x1bb   : > { %3019 = vmatprep.mubr.msk.f32.mxu1 %vm3441_vm2, %v3440_v10 }
 0x289   : > { %v923_v21 = vpop.f32.mrb[2].mxu1 }
 0x28a   : > { %v924_v22 = vadd.f32 %v3746_v20, %v923_v21  ;;  %v3006_v23 = vpop.f32.mrb[3].mxu1 }
 0x28c   : > { %v1005_v25 = vsel %vm851_vm3, %v924_v22, -inf }
 0x28d   : > { %1006 = vmax.xlane.f32.xlu1 %v1005_v25  ;;  %v1001_v26 = vpop.f32.mrb[4].mxu1 }
 0x28e   : > { %v1002_v27 = vadd.f32 %v3752_v24, %v1001_v26  ;;  %v3011_v28 = vpop.f32.mrb[5].mxu1 }
 0x290   : > { %v1008_v29 = vsel %vm851_vm3, %v1002_v27, -inf }
 0x291   : > { %1009 = vmax.xlane.f32.xlu1 %v1008_v29 }
 0x2a2   : > { %1029 = vrot.lane.b32.xlu1 %v3719_v14, %s3443_s15 }
 0x2a6   : > { %1105 = vrot.lane.b32.xlu1 %v3722_v15, %s3443_s15  ;;  %s3454_s15 = smov 16  }
 0x2aa   : > { %1185 = vrot.lane.b32.xlu1 %v3719_v14, %s3444_s25 }
 0x2ae   : > { %1263 = vrot.lane.b32.xlu1 %v3722_v15, %s3444_s25  ;;  %s3455_s25 = smov 24  }
 0x31a   : > { %v1007_v30 = vpop.xlane.xlu1 %1006 }
 0x31b   : > { %v1011_v31 = vsub.f32 %v924_v22, %v1007_v30 }
 0x31d   : > { %v1013_v32 = vmul.f32 1.442695, %v1011_v31 }
 0x31e   : > { %v1010_v33 = vpop.xlane.xlu1 %1009 }
 0x31f   : > { %3255 = vpow2.f32 %v1013_v32  ;;  %v1012_v34 = vsub.f32 %v1002_v27, %v1010_v33 }
 0x321   : > { %v1015_v35 = vmul.f32 1.442695, %v1012_v34 }
 0x322   : > { %v1030_v36 = vpop.permute.xlu1 %1029 }
 0x323   : > { %3257 = vpow2.f32 %v1015_v35  ;;  %3013 = vmatpush3.msra.mxu0 %v1030_v36 }
 0x324   : > { %3022 = vmatprep.subr.mxu0 %v3440_v10 }
 0x326   : > { %v1106_v37 = vpop.permute.xlu1 %1105 }
 0x327   : > { %3018 = vmatpush3.msra.mxu1 %v1106_v37 }
 0x328   : > { %3027 = vmatprep.subr.mxu1 %v3440_v10 }
 0x329   : > { %v3256_v38 = vpop.eup %3255 }
 0x32a   : > { %v1017_v39 = vsel %vm851_vm3, %v3256_v38, 0.0  ;;  %v1186_v42 = vpop.permute.xlu1 %1185 }
 0x32b   : > { %1018 = vadd.xlane.f32.xlu0 %v1017_v39 }
 0x32d   : > { %v3258_v40 = vpop.eup %3257 }
 0x32e   : > { %v1020_v41 = vsel %vm851_vm3, %v3258_v40, 0.0  ;;  %v1264_v43 = vpop.permute.xlu1 %1263 }
 0x32f   : > { %1021 = vadd.xlane.f32.xlu1 %v1020_v41 }
 0x340   : > { %1261 = vrot.lane.b32.xlu1 %v3736_v19, %s3445_s24 }
 0x341   : > { %1183 = vrot.lane.b32.xlu0 %v3728_v17, %s3445_s24 }
 0x3b8   : > { %v1019_v44 = vpop.xlane.xlu0 %1018 }
 0x3b9   : > { %3259 = vrcp.f32 %v1019_v44 }
 0x3bc   : > { %v1022_v45 = vpop.xlane.xlu1 %1021  ;;  %v1184_v50 = vpop.permute.xlu0 %1183 }
 0x3bd   : > { %3261 = vrcp.f32 %v1022_v45 }
 0x3c0   : > { %v1262_v51 = vpop.permute.xlu1 %1261 }
 0x3c3   : > { %v3260_v46 = vpop.eup %3259 }
 0x3c4   : > { %v3767_v47 = vmul.f32 %v3260_v46, %v3256_v38 }
 0x3c6   : > { %3015 = vmatmul.mubr.msk.f32.vlgmr.msra.gmra.mrb[0].mxu0 %vm851_vm3, %v3767_v47 }
 0x3c7   : > { %v3262_v48 = vpop.eup %3261  ;;  %3023 = vmatpush3.xpose.msk.msra.mxu0 %vm851_vm3, %v1186_v42  ;;  %3024 = vmatprep.mubr.msk.f32.mxu0 %vm3441_vm2, %v3440_v10 }
 0x3c8   : > { %v3774_v49 = vmul.f32 %v3262_v48, %v3258_v40  ;;  %3032 = vmatprep.subr.mxu0 %v3440_v10 }
 0x3ca   : > { %3020 = vmatmul.mubr.msk.f32.vlgmr.msra.gmra.mrb[6].mxu1 %vm851_vm3, %v3774_v49  ;;  %3025 = vmatmul.mubr.msk.f32.vlgmr.msra.gmra.mrb[2].mxu0 %vm851_vm3, %v1184_v50 }
 0x3cb   : > { %3028 = vmatpush3.xpose.msk.msra.mxu1 %vm851_vm3, %v1264_v43  ;;  %3029 = vmatprep.mubr.msk.f32.mxu1 %vm3441_vm2, %v3440_v10 }
 0x3cc   : > { %3037 = vmatprep.subr.mxu1 %v3440_v10  ;;  %3034 = vmatprep.mubr.msk.f32.mxu0 %vm3441_vm2, %v3440_v10 }
 0x3ce   : > { %3030 = vmatmul.mubr.msk.f32.vlgmr.msra.gmra.mrb[8].mxu1 %vm851_vm3, %v1262_v51 }
 0x3cf   : > { %3039 = vmatprep.mubr.msk.f32.mxu1 %vm3441_vm2, %v3440_v10 }
 0x499   : > { %v1101_v52 = vpop.f32.mrb[0].mxu0 }
 0x49a   : > { %1181 = vst.msk [vmem:[#allocation3] sm:$0xff] %vm851_vm3, %v1101_v52  ;;  %v3016_v53 = vpop.f32.mrb[1].mxu0 }
 0x49d   : > { %v1177_v54 = vpop.f32.mrb[6].mxu1  ;;  %v1257_v55 = vpop.f32.mrb[2].mxu0 }
 0x49e   : > { %1182 = vst.msk [vmem:[#allocation3 + $0x8] sm:$0xff] %vm851_vm3, %v1177_v54  ;;  %v1258_v56 = vadd.f32 %v3746_v20, %v1257_v55  ;;  %v3021_v57 = vpop.f32.mrb[7].mxu1  ;;  %v3026_v58 = vpop.f32.mrb[3].mxu0 }
 0x4a0   : > { %v1339_v59 = vsel %vm851_vm3, %v1258_v56, -inf }
 0x4a1   : > { %1340 = vmax.xlane.f32.xlu1 %v1339_v59  ;;  %v1335_v60 = vpop.f32.mrb[8].mxu1 }
 0x4a2   : > { %v1336_v61 = vadd.f32 %v3752_v24, %v1335_v60  ;;  %v3031_v62 = vpop.f32.mrb[9].mxu1 }
 0x4a4   : > { %v1342_v63 = vsel %vm851_vm3, %v1336_v61, -inf }
 0x4a5   : > { %1343 = vmax.xlane.f32.xlu0 %v1342_v63 }
 0x4b2   : > { %1363 = vrot.lane.b32.xlu1 %v3719_v14, %s3446_s4 }
 0x4b6   : > { %1528 = vrot.lane.b32.xlu1 %v3719_v14, %s3447_s26 }
 0x4ba   : > { %1606 = vrot.lane.b32.xlu1 %v3722_v15, %s3447_s26 }
 0x4bb   : > { %1439 = vrot.lane.b32.xlu0 %v3722_v15, %s3446_s4  ;;  %s4118_s4 = scalar_lea.vmem %s4053_s5, %s3643_s16 }
 0x4bf   : > { %1526 = vrot.lane.b32.xlu0 %v3728_v17, %s3448_s22 }
 0x52e   : > { %v1341_v0 = vpop.xlane.xlu1 %1340 }
 0x52f   : > { %v1345_v1 = vsub.f32 %v1258_v56, %v1341_v0 }
 0x531   : > { %v1347_v2 = vmul.f32 1.442695, %v1345_v1 }
 0x532   : > { %v1364_v3 = vpop.permute.xlu1 %1363  ;;  %v1344_v4 = vpop.xlane.xlu0 %1343 }
 0x533   : > { %3263 = vpow2.f32 %v1347_v2  ;;  %v1346_v5 = vsub.f32 %v1336_v61, %v1344_v4  ;;  %3033 = vmatpush3.msra.mxu0 %v1364_v3 }
 0x534   : > { %3042 = vmatprep.subr.mxu0 %v3440_v10 }
 0x535   : > { %v1349_v6 = vmul.f32 1.442695, %v1346_v5 }
 0x536   : > { %v1440_v8 = vpop.permute.xlu0 %1439  ;;  %v1529_v18 = vpop.permute.xlu1 %1528 }
 0x537   : > { %3265 = vpow2.f32 %v1349_v6  ;;  %3038 = vmatpush3.msra.mxu1 %v1440_v8 }
 0x538   : > { %3047 = vmatprep.subr.mxu1 %v3440_v10 }
 0x53a   : > { %v1607_v21 = vpop.permute.xlu1 %1606  ;;  %v1527_v29 = vpop.permute.xlu0 %1526 }
 0x53d   : > { %v3264_v11 = vpop.eup %3263 }
 0x53e   : > { %v1351_v12 = vsel %vm851_vm3, %v3264_v11, 0.0 }
 0x53f   : > { %1352 = vadd.xlane.f32.xlu1 %v1351_v12 }
 0x541   : > { %v3266_v13 = vpop.eup %3265 }
 0x542   : > { %v1354_v16 = vsel %vm851_vm3, %v3266_v13, 0.0 }
 0x543   : > { %1355 = vadd.xlane.f32.xlu1 %v1354_v16 }
 0x554   : > { %1604 = vrot.lane.b32.xlu1 %v3736_v19, %s3448_s22  ;;  %s4119_s22 = scalar_lea.vmem %s4054_s6, %s3643_s16 }
 0x5cc   : > { %v1353_v22 = vpop.xlane.xlu1 %1352 }
 0x5cd   : > { %3267 = vrcp.f32 %v1353_v22 }
 0x5d0   : > { %v1356_v23 = vpop.xlane.xlu1 %1355 }
 0x5d1   : > { %3269 = vrcp.f32 %v1356_v23 }
 0x5d4   : > { %v1605_v30 = vpop.permute.xlu1 %1604 }
 0x5d7   : > { %v3268_v25 = vpop.eup %3267 }
 0x5d8   : > { %v3805_v26 = vmul.f32 %v3268_v25, %v3264_v11 }
 0x5da   : > { %3035 = vmatmul.mubr.msk.f32.vlgmr.msra.gmra.mrb[4].mxu0 %vm851_vm3, %v3805_v26  ;;  %v1361_v60 = vadd.f32 %v3805_v26, %v3767_v47 }
 0x5db   : > { %v3270_v27 = vpop.eup %3269  ;;  %3043 = vmatpush3.xpose.msk.msra.mxu0 %vm851_vm3, %v1529_v18  ;;  %3044 = vmatprep.mubr.msk.f32.mxu0 %vm3441_vm2, %v3440_v10 }
 0x5dc   : > { %v3812_v28 = vmul.f32 %v3270_v27, %v3266_v13  ;;  %3052 = vmatprep.subr.mxu0 %v3440_v10 }
 0x5de   : > { %3040 = vmatmul.mubr.msk.f32.vlgmr.msra.gmra.mrb[10].mxu1 %vm851_vm3, %v3812_v28  ;;  %3045 = vmatmul.mubr.msk.f32.vlgmr.msra.gmra.mrb[6].mxu0 %vm851_vm3, %v1527_v29 }
 0x5df   : > { %3048 = vmatpush3.xpose.msk.msra.mxu1 %vm851_vm3, %v1607_v21  ;;  %3049 = vmatprep.mubr.msk.f32.mxu1 %vm3441_vm2, %v3440_v10 }
 0x5e0   : > { %3057 = vmatprep.subr.mxu1 %v3440_v10  ;;  %3054 = vmatprep.mubr.msk.f32.mxu0 %vm3441_vm2, %v3440_v10 }
 0x5e2   : > { %3050 = vmatmul.mubr.msk.f32.vlgmr.msra.gmra.mrb[12].mxu1 %vm851_vm3, %v1605_v30 }
 0x5e3   : > { %3059 = vmatprep.mubr.msk.f32.mxu1 %vm3441_vm2, %v3440_v10 }
 0x6ad   : > { %v3827_v31 = vpop.f32.mrb[4].mxu0 }
 0x6ae   : > { %v3036_v32 = vpop.f32.mrb[5].mxu0 }
 0x6b1   : > { %v3829_v33 = vpop.f32.mrb[10].mxu1  ;;  %v1600_v34 = vpop.f32.mrb[6].mxu0 }
 0x6b2   : > { %v1601_v35 = vadd.f32 %v3746_v20, %v1600_v34  ;;  %v3041_v36 = vpop.f32.mrb[11].mxu1  ;;  %v3046_v37 = vpop.f32.mrb[7].mxu0 }
 0x6b4   : > { %v1682_v38 = vsel %vm851_vm3, %v1601_v35, -inf }
 0x6b5   : > { %1683 = vmax.xlane.f32.xlu0 %v1682_v38  ;;  %v1678_v39 = vpop.f32.mrb[12].mxu1 }
 0x6b6   : > { %v1679_v40 = vadd.f32 %v3752_v24, %v1678_v39  ;;  %v3051_v41 = vpop.f32.mrb[13].mxu1 }
 0x6b8   : > { %v1685_v42 = vsel %vm851_vm3, %v1679_v40, -inf }
 0x6b9   : > { %1686 = vmax.xlane.f32.xlu1 %v1685_v42 }
 0x6ca   : > { %1706 = vrot.lane.b32.xlu1 %v3719_v14, %s3449_s17 }
 0x6cb   : > { %1782 = vrot.lane.b32.xlu0 %v3722_v15, %s3449_s17 }
 0x6ce   : > { %1871 = vrot.lane.b32.xlu1 %v3719_v14, %s3450_s0 }
 0x6d2   : > { %1949 = vrot.lane.b32.xlu1 %v3722_v15, %s3450_s0 }
 0x6d6   : > { %1947 = vrot.lane.b32.xlu1 %v3736_v19, %s3451_s29 }
 0x742   : > { %v1684_v43 = vpop.xlane.xlu0 %1683 }
 0x743   : > { %v1688_v44 = vsub.f32 %v1601_v35, %v1684_v43 }
 0x745   : > { %v1690_v45 = vmul.f32 1.442695, %v1688_v44 }
 0x746   : > { %v1783_v46 = vpop.permute.xlu0 %1782  ;;  %v1687_v48 = vpop.xlane.xlu1 %1686 }
 0x747   : > { %3271 = vpow2.f32 %v1690_v45  ;;  %v1689_v50 = vsub.f32 %v1679_v40, %v1687_v48  ;;  %3058 = vmatpush3.msra.mxu1 %v1783_v46  ;;  %v2218_v45 = vld [vmem:[%s3656_s23] sm:$0xff]  ;;  %v2219_v46 = vld [vmem:[%s3656_s23 + $0x8] sm:$0xff] }
 0x748   : > { %3067 = vmatprep.subr.mxu1 %v3440_v10  ;;  %v3131_v48 = vpack.c.bf16 %v2219_v46, %v2218_v45  ;;  %v2457_v45 = vld [vmem:[%s3683_s19 + $0x30] sm:$0xff]  ;;  %v2458_v46 = vld [vmem:[%s3683_s19 + $0x38] sm:$0xff] }
 0x749   : > { %v1692_v51 = vmul.f32 1.442695, %v1689_v50  ;;  %v2220_v50 = vld [vmem:[%s3656_s23 + $0x10] sm:$0xff] }
 0x74a   : > { %v1707_v52 = vpop.permute.xlu1 %1706 }
 0x74b   : > { %3273 = vpow2.f32 %v1692_v51  ;;  %3053 = vmatpush3.msra.mxu0 %v1707_v52  ;;  %v2221_v51 = vld [vmem:[%s3656_s23 + $0x18] sm:$0xff] }
 0x74c   : > { %3062 = vmatprep.subr.mxu0 %v3440_v10  ;;  %v3135_v52 = vpack.c.bf16 %v2221_v51, %v2220_v50  ;;  %v2910_v50 = vld [vmem:[%s711_s2] ss:$0 sm:$0xff] }
 0x74e   : > { %v1872_v58 = vpop.permute.xlu1 %1871 }
 0x751   : > { %v3272_v53 = vpop.eup %3271 }
 0x752   : > { %v1694_v54 = vsel %vm851_vm3, %v3272_v53, 0.0  ;;  %v1950_v0 = vpop.permute.xlu1 %1949 }
 0x753   : > { %1695 = vadd.xlane.f32.xlu0 %v1694_v54 }
 0x755   : > { %v3274_v19 = vpop.eup %3273 }
 0x756   : > { %v1697_v55 = vsel %vm851_vm3, %v3274_v19, 0.0 }
 0x757   : > { %1698 = vadd.xlane.f32.xlu0 %v1697_v55 }
 0x76d   : > { %1869 = vrot.lane.b32.xlu0 %v3728_v17, %s3451_s29  ;;  %v1362_v17 = vadd.f32 %v3812_v28, %v3774_v49  ;;  %v1948_v49 = vpop.permute.xlu1 %1947  ;;  %s4120_s29 = scalar_lea.vmem %s4055_s7, %s3643_s16 }
 0x7e0   : > { %v1696_v56 = vpop.xlane.xlu0 %1695 }
 0x7e1   : > { %3275 = vrcp.f32 %v1696_v56 }
 0x7e4   : > { %v1699_v57 = vpop.xlane.xlu0 %1698 }
 0x7e5   : > { %3277 = vrcp.f32 %v1699_v57 }
 0x7e8   : > { %v1870_v2 = vpop.permute.xlu0 %1869 }
 0x7eb   : > { %v3276_v59 = vpop.eup %3275 }
 0x7ec   : > { %v1702_v61 = vmul.f32 %v3276_v59, %v3272_v53 }
 0x7ee   : > { %v3847_v62 = vadd.f32 %v1702_v61, %v1361_v60  ;;  %3055 = vmatmul.mubr.msk.f32.vlgmr.msra.gmra.mrb[8].mxu0 %vm851_vm3, %v1702_v61  ;;  %v2905_v60 = vld [vmem:[%s4118_s4] ss:$0 sm:$0xff]  ;;  %s4121_s4 = sld [smem:[#allocation16_spill]] }
 0x7ef   : > { %v3278_v63 = vpop.eup %3277  ;;  %3063 = vmatpush3.xpose.msk.msra.mxu0 %vm851_vm3, %v1872_v58  ;;  %3064 = vmatprep.mubr.msk.f32.mxu0 %vm3441_vm2, %v3440_v10 }
 0x7f0   : > { %v1703_v1 = vmul.f32 %v3278_v63, %v3274_v19  ;;  %3072 = vmatprep.subr.mxu0 %v3440_v10 }
 0x7f2   : > { %v3856_v47 = vadd.f32 %v1703_v1, %v1362_v17  ;;  %3060 = vmatmul.mubr.msk.f32.vlgmr.msra.gmra.mrb[14].mxu1 %vm851_vm3, %v1703_v1  ;;  %3065 = vmatmul.mubr.msk.f32.vlgmr.msra.gmra.mrb[10].mxu0 %vm851_vm3, %v1870_v2 }
 0x7f3   : > { %3068 = vmatpush3.xpose.msk.msra.mxu1 %vm851_vm3, %v1950_v0  ;;  %3069 = vmatprep.mubr.msk.f32.mxu1 %vm3441_vm2, %v3440_v10 }
 0x7f4   : > { %3077 = vmatprep.subr.mxu1 %v3440_v10  ;;  %3074 = vmatprep.mubr.msk.f32.mxu0 %vm3441_vm2, %v3440_v10  ;;  %p2918_p8 = scmp.ne.s32.totalorder %s4121_s4, 1 }
 0x7f6   : > { %3070 = vmatmul.mubr.msk.f32.vlgmr.msra.gmra.mrb[16].mxu1 %vm851_vm3, %v1948_v49 }
 0x7f7   : > { %3079 = vmatprep.mubr.msk.f32.mxu1 %vm3441_vm2, %v3440_v10 }
 0x8c1   : > { %v1778_v3 = vpop.f32.mrb[8].mxu0 }
 0x8c2   : > { %v3056_v4 = vpop.f32.mrb[9].mxu0 }
 0x8c5   : > { %v1854_v5 = vpop.f32.mrb[14].mxu1  ;;  %v1943_v6 = vpop.f32.mrb[10].mxu0 }
 0x8c6   : > { %v1944_v8 = vadd.f32 %v3746_v20, %v1943_v6  ;;  %v3061_v11 = vpop.f32.mrb[15].mxu1  ;;  %v3066_v12 = vpop.f32.mrb[11].mxu0 }
 0x8c8   : > { %v2025_v13 = vsel %vm851_vm3, %v1944_v8, -inf }
 0x8c9   : > { %2026 = vmax.xlane.f32.xlu0 %v2025_v13  ;;  %v2021_v16 = vpop.f32.mrb[16].mxu1  ;;  %v2357_v13 = vld [vmem:[%s3673_s20] sm:$0xff] }
 0x8ca   : > { %v2022_v18 = vadd.f32 %v3752_v24, %v2021_v16  ;;  %v3071_v21 = vpop.f32.mrb[17].mxu1  ;;  %v2358_v16 = vld [vmem:[%s3673_s20 + $0x8] sm:$0xff] }
 0x8cb   : > { %v2359_v21 = vld [vmem:[%s3673_s20 + $0x10] sm:$0xff] }
 0x8cc   : > { %v2028_v22 = vsel %vm851_vm3, %v2022_v18, -inf }
 0x8cd   : > { %2029 = vmax.xlane.f32.xlu1 %v2028_v22  ;;  %v2360_v22 = vld [vmem:[%s3673_s20 + $0x18] sm:$0xff] }
 0x8de   : > { %2049 = vrot.lane.b32.xlu1 %v3719_v14, %s3452_s28 }
 0x8e2   : > { %1517 = vrot.lane.b32.xlu1 %v3827_v31, %s3453_s18 }
 0x8e6   : > { %1519 = vrot.lane.b32.xlu1 %v3829_v33, %s3453_s18 }
 0x8ea   : > { %1862 = vrot.lane.b32.xlu1 %v1854_v5, %s3454_s15 }
 0x956   : > { %v2027_v10 = vpop.xlane.xlu0 %2026 }
 0x957   : > { %v2031_v20 = vsub.f32 %v1944_v8, %v2027_v10  ;;  %v3143_v10 = vpack.c.bf16 %v2360_v22, %v2359_v21  ;;  %v2916_v21 = vld [vmem:[%s722_s30] ss:$0 sm:$0xff] }
 0x959   : > { %v2033_v24 = vmul.f32 1.442695, %v2031_v20  ;;  %v2451_v20 = vld [vmem:[%s3683_s19] sm:$0xff] }
 0x95a   : > { %v2030_v23 = vpop.xlane.xlu1 %2029 }
 0x95b   : > { %3279 = vpow2.f32 %v2033_v24  ;;  %v2032_v25 = vsub.f32 %v2022_v18, %v2030_v23  ;;  %v3139_v18 = vpack.c.bf16 %v2358_v16, %v2357_v13  ;;  %v2452_v24 = vld [vmem:[%s3683_s19 + $0x8] sm:$0xff]  ;;  %v2453_v23 = vld [vmem:[%s3683_s19 + $0x10] sm:$0xff] }
 0x95d   : > { %v2035_v26 = vmul.f32 1.442695, %v2032_v25  ;;  %v3147_v25 = vpack.c.bf16 %v2452_v24, %v2451_v20  ;;  %v2917_v20 = vld [vmem:[%s725_s1] ss:$0 sm:$0xff] }
 0x95e   : > { %v2050_v27 = vpop.permute.xlu1 %2049 }
 0x95f   : > { %3281 = vpow2.f32 %v2035_v26  ;;  %3073 = vmatpush3.msra.mxu0 %v2050_v27  ;;  %v2454_v26 = vld [vmem:[%s3683_s19 + $0x18] sm:$0xff] }
 0x960   : > { %3132 = vmatprep.subr.bf16.mxu0 %v3131_v48  ;;  %v3151_v27 = vpack.c.bf16 %v2454_v26, %v2453_v23 }
 0x962   : > { %v1518_v14 = vpop.permute.xlu1 %1517 }
 0x963   : > { %1524 = vst.msk [vmem:[#allocation3] sm:$0xff] %vm1523_vm4, %v1518_v14  ;;  %v2455_v14 = vld [vmem:[%s3683_s19 + $0x20] sm:$0xff] }
 0x965   : > { %v3280_v28 = vpop.eup %3279 }
 0x966   : > { %v1520_v29 = vpop.permute.xlu1 %1519  ;;  %v2037_v30 = vsel %vm851_vm3, %v3280_v28, 0.0 }
 0x967   : > { %1525 = vst.msk [vmem:[#allocation3 + $0x8] sm:$0xff] %vm1523_vm4, %v1520_v29  ;;  %2038 = vadd.xlane.f32.xlu0 %v2037_v30 }
 0x969   : > { %v3282_v31 = vpop.eup %3281 }
 0x96a   : > { %v1863_v32 = vpop.permute.xlu1 %1862  ;;  %v2040_v33 = vsel %vm851_vm3, %v3282_v31, 0.0 }
 0x96b   : > { %1868 = vst.msk [vmem:[#allocation3 + $0x8] sm:$0xff] %vm1866_vm5, %v1863_v32  ;;  %2041 = vadd.xlane.f32.xlu0 %v2040_v33 }
 0x981   : > { %2125 = vrot.lane.b32.xlu0 %v3722_v15, %s3452_s28 }
 0x985   : > { %1860 = vrot.lane.b32.xlu0 %v1778_v3, %s3454_s15 }
 0x9f4   : > { %v2039_v34 = vpop.xlane.xlu0 %2038 }
 0x9f5   : > { %3283 = vrcp.f32 %v2039_v34 }
 0x9f8   : > { %v2042_v35 = vpop.xlane.xlu0 %2041 }
 0x9f9   : > { %3285 = vrcp.f32 %v2042_v35 }
 0x9fc   : > { %v2126_v36 = vpop.permute.xlu0 %2125 }
 0x9fd   : > { %3078 = vmatpush3.msra.mxu1 %v2126_v36 }
 0x9fe   : > { %3140 = vmatprep.subr.bf16.mxu1 %v3139_v18 }
 0x9ff   : > { %v3284_v37 = vpop.eup %3283 }
 0xa00   : > { %v2045_v38 = vmul.f32 %v3284_v37, %v3280_v28  ;;  %v1861_v39 = vpop.permute.xlu0 %1860  ;;  %v2456_v28 = vld [vmem:[%s3683_s19 + $0x28] sm:$0xff]  ;;  %v2908_v37 = vld [vmem:[%s4119_s22] ss:$0 sm:$0xff] }
 0xa01   : > { %1867 = vst.msk [vmem:[#allocation3] sm:$0xff] %vm1866_vm5, %v1861_v39  ;;  %v3155_v29 = vpack.c.bf16 %v2456_v28, %v2455_v14  ;;  %v2909_v39 = vld [vmem:[%s4120_s29] ss:$0 sm:$0xff] }
 0xa02   : > { %v2047_v15 = vadd.f32 %v2045_v38, %v3847_v62  ;;  %3075 = vmatmul.mubr.msk.f32.vlgmr.msra.gmra.mrb[12].mxu0 %vm851_vm3, %v2045_v38 }
 0xa03   : > { %v3286_v40 = vpop.eup %3285  ;;  %3134 = vmatpush3.bf16.msra.mxu0 %v3131_v48  ;;  %v3159_v48 = vpack.c.bf16 %v2458_v46, %v2457_v45 }
 0xa04   : > { %v2212_v41 = vmul.f32 0.25, %v2047_v15  ;;  %v2046_v42 = vmul.f32 %v3286_v40, %v3282_v31  ;;  %3136 = vmatprep.subr.bf16.mxu0 %v3135_v52 }
 0xa06   : > { %2214 = vst.msk [vmem:[%s3697_s27] sm:$0xff] %vm851_vm3, %v2212_v41  ;;  %v2048_v43 = vadd.f32 %v2046_v42, %v3856_v47  ;;  %3080 = vmatmul.mubr.msk.f32.vlgmr.msra.gmra.mrb[18].mxu1 %vm851_vm3, %v2046_v42 }
 0xa07   : > { %3138 = vmatpush3.bf16.msra.mxu0 %v3135_v52  ;;  %3142 = vmatpush3.bf16.msra.mxu1 %v3139_v18 }
 0xa08   : > { %v2213_v44 = vmul.f32 0.25, %v2048_v43  ;;  %3144 = vmatprep.subr.bf16.mxu1 %v3143_v10  ;;  %3148 = vmatprep.subr.bf16.mxu0 %v3147_v25 }
 0xa0a   : > { %2215 = vst.msk [vmem:[%s3697_s27 + $0x8] sm:$0xff] %vm851_vm3, %v2213_v44 }
 0xa0b   : > { %3146 = vmatpush3.bf16.msra.mxu1 %v3143_v10 }
 0xad5   : > { %v2121_v53 = vpop.f32.mrb[12].mxu0 }
 0xad6   : > { %2203 = vrot.lane.b32.xlu0 %v2121_v53, %s3455_s25  ;;  %v3076_v54 = vpop.f32.mrb[13].mxu0 }
 0xad9   : > { %v2197_v19 = vpop.f32.mrb[18].mxu1 }
 0xada   : > { %2205 = vrot.lane.b32.xlu1 %v2197_v19, %s3455_s25  ;;  %v3081_v55 = vpop.f32.mrb[19].mxu1 }
 0xb48   : > { %v2204_v56 = vpop.permute.xlu0 %2203 }
 0xb49   : > { %2210 = vst.msk [vmem:[#allocation3] sm:$0xff] %vm2209_vm6, %v2204_v56  ;;  %v2913_v56 = vld [vmem:[%s719_s21] ss:$0 sm:$0xff] }
 0xb4c   : > { %v2206_v57 = vpop.permute.xlu1 %2205 }
 0xb4d   : > { %2211 = vst.msk [vmem:[#allocation3 + $0x8] sm:$0xff] %vm2209_vm6, %v2206_v57 }
 0xb50   : > { %v2216_v58 = vld [vmem:[#allocation3] sm:$0xff] }
 0xb51   : > { %3090 = vmatprep.mubr.msk.f32.mxu0 %vm750_vm1, %v2216_v58 }
 0xb54   : > { %v2217_v59 = vld [vmem:[#allocation3 + $0x8] sm:$0xff] }
 0xb55   : > { %3091 = vmatmul.mubr.msk.f32.vlgmr.msra.gmra.mrb[14].mxu0 %vm750_vm1, %v2217_v59 }
 0xb56   : > { %3150 = vmatpush3.bf16.msra.mxu0 %v3147_v25 }
 0xb57   : > { %3152 = vmatprep.subr.bf16.mxu0 %v3151_v27 }
 0xb5a   : > { %3154 = vmatpush3.bf16.msra.mxu0 %v3151_v27 }
 0xb5b   : > { %3156 = vmatprep.subr.bf16.mxu0 %v3155_v29 }
 0xb5e   : > { %3158 = vmatpush3.bf16.msra.mxu0 %v3155_v29 }
 0xb5f   : > { %3160 = vmatprep.subr.bf16.mxu0 %v3159_v48 }
 0xb62   : > { %3162 = vmatpush3.bf16.msra.mxu0 %v3159_v48 }
 0xc28   : > { %v3092_v61 = vpop.f32.mrb[14].mxu0 }
 0xc29   : > { %v2307_v62 = vadd.f32 %v3092_v61, %v2905_v60  ;;  %v2301_v63 = vpop.f32.mrb[15].mxu0 }
 0xc2a   : > { %v2302_v0 = vadd.f32 %v2905_v60, %v2301_v63 }
 0xc2b   : > { %v2311_v17 = vadd.f32 %v2307_v62, %v3704_v9 }
 0xc2c   : > { %v2310_v1 = vadd.f32 %v2302_v0, %v3700_v7 }
 0xc2d   : > { %v2315_v2 = vsel %vm750_vm1, %v2311_v17, 0.0 }
 0xc2e   : > { %2316 = vadd.xlane.f32.xlu1 %v2315_v2  ;;  %v2312_v47 = vsel %vm750_vm1, %v2310_v1, 0.0 }
 0xc2f   : > { %2313 = vadd.xlane.f32.xlu0 %v2312_v47 }
 0xcbb   : > { %v2317_v49 = vpop.xlane.xlu1 %2316 }
 0xcbc   : > { %v2320_v3 = vmul.f32 0.03125, %v2317_v49  ;;  %v2314_v4 = vpop.xlane.xlu0 %2313 }
 0xcbd   : > { %v2319_v5 = vmul.f32 0.03125, %v2314_v4 }
 0xcbe   : > { %v2322_v6 = vsub.f32 %v2311_v17, %v2320_v3 }
 0xcbf   : > { %v2321_v8 = vsub.f32 %v2310_v1, %v2319_v5 }
 0xcc0   : > { %v2324_v9 = vmul.f32 %v2322_v6, %v2322_v6 }
 0xcc1   : > { %v2323_v11 = vmul.f32 %v2321_v8, %v2321_v8 }
 0xcc2   : > { %v2328_v12 = vsel %vm750_vm1, %v2324_v9, 0.0 }
 0xcc3   : > { %v2325_v7 = vsel %vm750_vm1, %v2323_v11, 0.0 }
 0xcc4   : > { %2326 = vadd.xlane.f32.xlu0 %v2325_v7 }
 0xcc8   : > { %2329 = vadd.xlane.f32.xlu0 %v2328_v12 }
 0xd51   : > { %v2327_v30 = vpop.xlane.xlu0 %2326 }
 0xd52   : > { %v2331_v31 = vmul.f32 0.03125, %v2327_v30 }
 0xd54   : > { %v2333_v32 = vadd.f32 1e-05, %v2331_v31 }
 0xd55   : > { %v2330_v33 = vpop.xlane.xlu0 %2329 }
 0xd56   : > { %3287 = vrsqrt.f32 %v2333_v32  ;;  %v2332_v34 = vmul.f32 0.03125, %v2330_v33 }
 0xd58   : > { %v2334_v35 = vadd.f32 1e-05, %v2332_v34 }
 0xd5a   : > { %3289 = vrsqrt.f32 %v2334_v35 }
 0xd60   : > { %v3288_v36 = vpop.eup %3287 }
 0xd61   : > { %v2337_v38 = vmul.f32 %v3288_v36, %v2321_v8 }
 0xd63   : > { %v2346_v15 = vmul.f32 %v2908_v37, %v2337_v38 }
 0xd64   : > { %v3290_v40 = vpop.eup %3289 }
 0xd65   : > { %v2338_v41 = vmul.f32 %v3290_v40, %v2322_v6  ;;  %v2355_v42 = vadd.f32 %v2909_v39, %v2346_v15 }
 0xd67   : > { %v2347_v43 = vmul.f32 %v2908_v37, %v2338_v41  ;;  %3101 = vmatprep.mubr.msk.f32.mxu1 %vm750_vm1, %v2355_v42 }
 0xd69   : > { %v2356_v44 = vadd.f32 %v2909_v39, %v2347_v43 }
 0xd6b   : > { %3102 = vmatmul.mubr.msk.f32.vlgmr.msra.gmra.mrb[20].mxu1 %vm750_vm1, %v2356_v44 }
 0xe3e   : > { %v3103_v51 = vpop.f32.mrb[20].mxu1 }
 0xe3f   : > { %v2446_v52 = vadd.f32 %v3103_v51, %v2910_v50  ;;  %v2440_v53 = vpop.f32.mrb[21].mxu1 }
 0xe40   : > { %v2441_v54 = vadd.f32 %v2910_v50, %v2440_v53 }
 0xe41   : > { %v2450_v55 = vmax.f32 %v2446_v52, 0.0 }
 0xe42   : > { %v2449_v19 = vmax.f32 %v2441_v54, 0.0 }
 0xe44   : > { %3120 = vmatprep.mubr.msk.f32.mxu0 %vm2466_vm7, %v2449_v19 }
 0xe45   : > { %3121 = vmatmul.mubr.msk.f32.vlgmr.msra.gmra.mrb[16].mxu0 %vm2466_vm7, %v2450_v55 }
 0xf18   : > { %v3122_v57 = vpop.f32.mrb[16].mxu0 }
 0xf19   : > { %v2545_v58 = vadd.f32 %v3122_v57, %v2913_v56  ;;  %v2539_v59 = vpop.f32.mrb[17].mxu0 }
 0xf1a   : > { %v2540_v60 = vadd.f32 %v2913_v56, %v2539_v59 }
 0xf1b   : > { %v2549_v61 = vadd.f32 %v2545_v58, %v2356_v44 }
 0xf1c   : > { %v2548_v62 = vadd.f32 %v2540_v60, %v2355_v42 }
 0xf1d   : > { %v2553_v63 = vsel %vm750_vm1, %v2549_v61, 0.0 }
 0xf1e   : > { %2554 = vadd.xlane.f32.xlu0 %v2553_v63  ;;  %v2550_v0 = vsel %vm750_vm1, %v2548_v62, 0.0 }
 0xf1f   : > { %2551 = vadd.xlane.f32.xlu1 %v2550_v0 }
 0xfab   : > { %v2555_v17 = vpop.xlane.xlu0 %2554 }
 0xfac   : > { %v2557_v1 = vmul.f32 0.03125, %v2555_v17  ;;  %v2552_v2 = vpop.xlane.xlu1 %2551 }
 0xfad   : > { %v2556_v47 = vmul.f32 0.03125, %v2552_v2 }
 0xfae   : > { %v2559_v49 = vsub.f32 %v2549_v61, %v2557_v1 }
 0xfaf   : > { %v2558_v3 = vsub.f32 %v2548_v62, %v2556_v47 }
 0xfb0   : > { %v2561_v4 = vmul.f32 %v2559_v49, %v2559_v49 }
 0xfb1   : > { %v2560_v5 = vmul.f32 %v2558_v3, %v2558_v3 }
 0xfb2   : > { %v2565_v6 = vsel %vm750_vm1, %v2561_v4, 0.0 }
 0xfb3   : > { %2566 = vadd.xlane.f32.xlu0 %v2565_v6  ;;  %v2562_v8 = vsel %vm750_vm1, %v2560_v5, 0.0 }
 0xfb4   : > { %2563 = vadd.xlane.f32.xlu1 %v2562_v8 }
0x1040   : > { %v2567_v11 = vpop.xlane.xlu0 %2566 }
0x1041   : > { %v2569_v7 = vmul.f32 0.03125, %v2567_v11  ;;  %v2564_v9 = vpop.xlane.xlu1 %2563 }
0x1042   : > { %v2568_v12 = vmul.f32 0.03125, %v2564_v9 }
0x1043   : > { %v2571_v13 = vadd.f32 1e-05, %v2569_v7 }
0x1044   : > { %v2570_v16 = vadd.f32 1e-05, %v2568_v12 }
0x1045   : > { %3291 = vrsqrt.f32 %v2571_v13 }
0x1046   : > { %3293 = vrsqrt.f32 %v2570_v16 }
0x104f   : > { %v3292_v18 = vpop.eup %3291 }
0x1050   : > { %v3294_v22 = vpop.eup %3293  ;;  %v2575_v10 = vmul.f32 %v3292_v18, %v2559_v49 }
0x1051   : > { %v2574_v24 = vmul.f32 %v3294_v22, %v2558_v3  ;;  %2599 = sbr.rel (%p2918_p8) target bundleno = 4192 (0x1060), region = 88 }
0x1052   : > { %v2584_v23 = vmul.f32 %v2916_v21, %v2575_v10 }
0x1053   : > { %v2583_v25 = vmul.f32 %v2916_v21, %v2574_v24 }
0x1054   : > { %v2593_v26 = vadd.f32 %v2917_v20, %v2584_v23 }
0x1055   : > { %v2592_v27 = vadd.f32 %v2917_v20, %v2583_v25 }
0x1056   : > { %2595 = vst.msk [vmem:[#allocation2 + $0x8] sm:$0xff] %vm750_vm1, %v2593_v26 }
0x1057   : > { %2594 = vst.msk [vmem:[#allocation2] sm:$0xff] %vm750_vm1, %v2592_v27 }
0x105d   : > { %v2601_v28 = vld [vmem:[#allocation2 + $0x8] sm:$0xff] }
0x105e   : > { %v2600_v14 = vld [vmem:[#allocation2] sm:$0xff]  ;;  %2603 = vst.msk [vmem:[#allocation7 + $0x8] sm:$0xff] %vm750_vm1, %v2601_v28 }
0x105f   : > { %2602 = vst.msk [vmem:[#allocation7] sm:$0xff] %vm750_vm1, %v2600_v14 }
0x1060 PF: > { %s3456_s1 = smov [#allocation7]   ;;  %s4122_s16 = sld [smem:[#allocation19_spill]] }
0x1061   : > { %s2618_s30 = sshll.u32 %s3456_s1, 4  ;;  %s2619_s30 = int_to_ptr.vmem [resolvable:$true] %s2618_s30 }
0x1062   : > { %s3323_s20 = scalar_lea.vmem %s2619_s30, 256  ;;  %p3330_p5 = scmp.lt.s32.totalorder %s2619_s30, %s2619_s30 }
0x1063   : > { %p3324_p10 = scmp.ne.s32.totalorder %s2619_s30, %s3323_s20  ;;  %p3331_p6 = scmp.lt.s32.totalorder %s3323_s20, %s3323_s20 }
0x1065   : > { %p3332_p7 = por %p3331_p6, %p3330_p5 }
0x1066   : > { %p4123_p11 = scmp.ne.s32.totalorder %s4122_s16, 0 }
0x1068   : > { %p3325_p13 = pnand %p3324_p10, %p4123_p11 }
0x106a   : > { %p3326_p1 = pneg %p3325_p13 }
0x106c   : > { %p3333_p9 = pnand %p3332_p7, %p3326_p1 }
0x106e   : > { %3336 = shalt.err (!%p3333_p9)
}
0x106f   : > { %s4124_s17 = sld [smem:[#allocation28_spill]] }
0x1075   : > { %s3337_s0 = scalar_lea.hbm %s4124_s17, 256 }
0x1076   : > { %p3338_p12 = scmp.ne.s32.totalorder %s4124_s17, %s3337_s0  ;;  %p3343_p2 = scmp.lt.u32.totalorder %s3337_s0, %s4124_s17 }
0x1078   : > { %p3339_p0 = pnand %p3338_p12, %p4123_p11 }
0x107a   : > { %p3340_p3 = pneg %p3339_p0 }
0x107c   : > { %p3345_p4 = pnand %p3343_p2, %p3340_p3 }
0x107e   : > { %3348 = shalt.err (!%p3345_p4)
}
0x107f   : > { %s3457_s23 = smov 128   ;;  %s4125_s21 = sld [smem:[#allocation16_spill]] }
0x1080   : > { %s4126_s24 = sld [smem:[#allocation14_spill]]  ;;  %s4127_s4 = sld [smem:[#allocation21_spill]] }
0x1081   : > { %3168 = dma.vmem_to_hbm [thread:$0]  (%p4123_p11), %s2619_s30, 256, %s4124_s17, [#allocation6], %s3457_s23, %s3457_s23, %s3453_s18  }
0x1082   : > { %s2636_s20 = sshll.u32 %s3697_s27, 4  ;;  %s4128_s0 = sld [smem:[#allocation29_spill]]  ;;  %s3991_s20 = int_to_ptr.vmem [resolvable:$true] %s2636_s20 }
0x1083   : > { %s3349_s25 = scalar_lea.vmem %s3991_s20, 256  ;;  %s3458_s30 = smov [#allocation8]  }
0x1084   : > { %p3350_p8 = scmp.ne.s32.totalorder %s3991_s20, %s3349_s25  ;;  %s3353_s27 = sshll.u32 %s3458_s30, 4  ;;  %s3354_s27 = int_to_ptr.vmem [resolvable:$false] %s3353_s27 }
0x1085   : > { %s2930_s1 = sshll.u32 %s4125_s21, 8  ;;  %s3355_s2 = scalar_lea.vmem %s3354_s27, 512 }
0x1086   : > { %s4129_s28 = sand.u32 1, %s4126_s24   ;;  %p4130_p10 = scmp.ne.s32.totalorder %s4127_s4, 0 }
0x1087   : > { %s3995_s15 = scalar_lea.sflag [#allocation9], %s4129_s28  ;;  %p3356_p5 = scmp.lt.s32.totalorder %s3991_s20, %s3354_s27 }
0x1088   : > { %s3989_s29 = scalar_lea.hbm %s4128_s0, %s2930_s1  ;;  %p3351_p13 = pnand %p3350_p8, %p4130_p10 }
0x1089   : > { %p3357_p6 = scmp.lt.s32.totalorder %s3355_s2, %s3349_s25 }
0x108a   : > { %p3352_p1 = pneg %p3351_p13 }
0x108b   : > { %p3358_p7 = por %p3357_p6, %p3356_p5 }
0x108d   : > { %p3359_p9 = pnand %p3358_p7, %p3352_p1 }
0x108f   : > { %3362 = shalt.err (!%p3359_p9)
}
0x1090   : > { %s3363_s19 = scalar_lea.hbm %s3989_s29, 256  ;;  %s3367_s1 = scalar_lea.hbm %s4128_s0, 512 }
0x1091   : > { %p3364_p12 = scmp.ne.s32.totalorder %s3989_s29, %s3363_s19  ;;  %p3368_p2 = scmp.lt.u32.totalorder %s3989_s29, %s4128_s0 }
0x1092   : > { %p3369_p4 = scmp.lt.u32.totalorder %s3367_s1, %s3363_s19  ;;  %p3371_p13 = scmp.lt.u32.totalorder %s3363_s19, %s3989_s29 }
0x1093   : > { %p3365_p0 = pnand %p3364_p12, %p4130_p10 }
0x1094   : > { %p3370_p8 = por %p3369_p4, %p3368_p2 }
0x1095   : > { %p3366_p3 = pneg %p3365_p0 }
0x1096   : > { %p3372_p1 = por %p3371_p13, %p3370_p8 }
0x1098   : > { %p3373_p5 = pnand %p3372_p1, %p3366_p3 }
0x109a   : > { %3376 = shalt.err (!%p3373_p5)
}
0x109b   : > { %3169 = dma.vmem_to_hbm [thread:$0]  (%p4130_p10), %s3991_s20, 256, %s3989_s29, %s3995_s15, %s3457_s23, %s3457_s23, %s3453_s18  }
0x109c   : > { %3406 = dma.done.wait (%p4123_p11), [#allocation6], 256  }
0x109d   : > { %3408 = vsyncadd (%p4123_p11), [#allocation6], 4294967040 }
0x109e PF: > { %s4131_s28 = sld [smem:[#allocation18_spill]]  ;;  %s4132_s25 = sld [smem:[#allocation13_spill]] }
0x109f   : > { %s4133_s30 = sld [smem:[#allocation22_spill]] }
0x10a4   : > { %p3185_p6 = scmp.ge.s32.totalorder %s4131_s28, 2  ;;  %s2655_s27 = sand.u32 1, %s4132_s25  }
0x10a5   : > { %p4134_p7 = scmp.ne.s32.totalorder %s4133_s30, 0  ;;  %s2656_s4 = scalar_lea.sflag [#allocation9], %s2655_s27 }
0x10a7   : > { %p3178_p9 = pnand %p3185_p6, %p4134_p7 }
0x10a9   : > { %3410 = dma.done.wait (!%p3178_p9), %s2656_s4, 256  }
0x10aa   : > { %3412 = vsyncadd (!%p3178_p9), %s2656_s4, 4294967040  ;;  %s31_s23 = sadd.s32 1, %s4131_s28   ;;  %s4135_s18 = sld [smem:[#allocation14_spill]] }
0x10ab   : > { %p28_p12 = scmp.ge.s32.totalorder %s31_s23, 4   ;;  %s4136_s19 = sld [smem:[#allocation15_spill]] }
0x10ac   : > { %s4137_s20 = sld [smem:[#allocation23_spill]]  ;;  %s4138_s21 = sld [smem:[#allocation17_spill]] }
0x10ad   : > { %s4139_s22 = sld [smem:[#allocation20_spill]]  ;;  %30 = sbr.rel (!%p28_p12) target bundleno = 13 (0xd), region = 171 }
0x10b4   :  { %2661 = vsyncpa [#allocation5], 1 }
0x10b5   :  { %2663 = vsyncpa [#allocation5 + $0x1], 1 }
0x10b6   :  { %2664 = vsyncpa [#allocation6], 1 }
0x10b7   :  { %2666 = vsyncpa [#allocation6 + $0x1], 1 }
0x10b8   :  { %2667 = vsyncpa [#allocation9], 1 }
0x10b9   :  { %2669 = vsyncpa [#allocation9 + $0x1], 1 }

</bundles_post_ra>
